<compile_context>
chip_gen: v7x
topology: tpu7x:2x2x1
jax: 0.10.0
libtpu: 0.0.40
codegen_flags: <defaults>
</compile_context>

<pallas_src>
import functools

import jax
import jax.numpy as jnp
import numpy as np
from jax import lax
from jax.experimental import pallas as pl
from jax.experimental.pallas import tpu as pltpu


def _decoder_kernel(xproj_ref, whh_ref, wout_ref, bout_ref, out_ref, hs_scr,
                    *, T, H, S, R, Bp):
    """Whole sequence in one kernel invocation.

    xproj_ref : (Bp, 4H)       precomputed z@W_ih^T + b (g columns pre-scaled by 2)
    whh_ref   : (H, 4H)        W_hh^T (g columns pre-scaled by 2)
    wout_ref  : (H, out_lanes) fused [sensor | route | 0-pad] head weights
    bout_ref  : (1, out_lanes) fused head bias
    out_ref   : (T*Bp, out_lanes) lane-dense output slab
    hs_scr    : (T*Bp, H)      VMEM scratch holding every hidden state
    """
    xproj = xproj_ref[...]               # (Bp, 4H) — loop invariant
    whh = whh_ref[...]                   # (H, 4H)  — loop invariant

    def step(t, carry):
        h, c = carry
        gates = xproj + jnp.dot(h, whh, preferred_element_type=jnp.float32)  # (Bp, 4H)
        s = jax.nn.sigmoid(gates)        # single full-width EUP pass over all 4 gates
        i_g = s[:, 0 * H:1 * H]
        f_g = s[:, 1 * H:2 * H]
        g_g = 2.0 * s[:, 2 * H:3 * H] - 1.0   # tanh(g) == 2*sigmoid(2g) - 1 (2 folded into weights)
        o_g = s[:, 3 * H:4 * H]
        c_new = f_g * c + i_g * g_g
        h_new = o_g * (2.0 * jax.nn.sigmoid(2.0 * c_new) - 1.0)
        row = pl.multiple_of(t * Bp, Bp)       # sublane-aligned store
        hs_scr[pl.ds(row, Bp), :] = h_new
        return (h_new, c_new)

    zeros = jnp.zeros((Bp, H), jnp.float32)
    lax.fori_loop(0, T, step, (zeros, zeros), unroll=True)

    # Deferred output heads: one fused MXU matmul over the whole (T*Bp, H) slab.
    hs = hs_scr[...]                                                   # (T*Bp, H)
    full = jnp.dot(hs, wout_ref[...],
                   preferred_element_type=jnp.float32) + bout_ref[...]  # (T*Bp, 128)

    # Masked in-place softmax on the route columns [S, S+R); sensor columns pass through;
    # padding columns are already exactly 0 (zero weights + zero bias).
    col = lax.broadcasted_iota(jnp.int32, full.shape, 1)
    is_route = (col >= S) & (col < S + R)
    m = jnp.max(jnp.where(is_route, full, -1e30), axis=-1, keepdims=True)
    e = jnp.where(is_route, jnp.exp(jnp.where(is_route, full - m, 0.0)), 0.0)
    denom = jnp.sum(e, axis=-1, keepdims=True)
    r0 = pl.reciprocal(denom, approx=True)
    inv = r0 * (2.0 - denom * r0)        # one Newton step keeps 1e-5 tolerance
    out_ref[...] = jnp.where(is_route, e * inv, full)   # single lane-dense unmasked store


def autoregressive_decoder_forward(z, params, seq_len):
    """Pallas implementation of AutoRegressiveDecoder.forward(z, seq_len).

    z: (B, num_latent) float32
    Returns (sensor_recon (B, T, sensor_dim), route_recon (B, T, num_routes)).
    """
    B, _ = z.shape
    wih_t = params["wih_t"]     # (L, 4H)
    whh_t = params["whh_t"]     # (H, 4H)
    b = params["b"]             # (1, 4H)  == b_ih + b_hh
    ws_t = params["ws_t"]       # (H, S)
    bs = params["bs"]           # (1, S)
    wr_t = params["wr_t"]       # (H, R)
    br = params["br"]           # (1, R)
    H = whh_t.shape[0]
    S = ws_t.shape[1]
    R = wr_t.shape[1]
    T = int(seq_len)

    # Pad batch up to a sublane multiple of 8 (dead rows computed and discarded).
    B_pad = ((B + 7) // 8) * 8
    z_p = jnp.pad(z, ((0, B_pad - B), (0, 0))) if B_pad != B else z

    # Fold the factor 2 of tanh(x)=2*sigmoid(2x)-1 into the g-gate columns (PyTorch order i,f,g,o).
    gate_scale = jnp.ones((4 * H,), jnp.float32).at[2 * H:3 * H].set(2.0)

    # Hoist the loop-invariant input projection: z is identical at every timestep.
    xproj = (z_p @ wih_t + b) * gate_scale[None, :]     # (B_pad, 4H)
    whh_s = whh_t * gate_scale[None, :]                 # (H, 4H)

    # Fused, lane-padded output head: columns [0:S]=sensor, [S:S+R]=route, rest zero.
    out_lanes = ((S + R + 127) // 128) * 128
    w_out = jnp.zeros((H, out_lanes), jnp.float32)
    w_out = w_out.at[:, 0:S].set(ws_t).at[:, S:S + R].set(wr_t)
    b_out = jnp.zeros((1, out_lanes), jnp.float32)
    b_out = b_out.at[:, 0:S].set(bs).at[:, S:S + R].set(br)

    kernel = functools.partial(_decoder_kernel, T=T, H=H, S=S, R=R, Bp=B_pad)

    full2d = lambda shape: pl.BlockSpec(shape, lambda i: (0, 0))

    out = pl.pallas_call(
        kernel,
        out_shape=jax.ShapeDtypeStruct((T * B_pad, out_lanes), jnp.float32),
        grid_spec=pltpu.PrefetchScalarGridSpec(
            num_scalar_prefetch=0,
            grid=(1,),
            in_specs=[
                full2d((B_pad, 4 * H)),        # precomputed input projection
                full2d((H, 4 * H)),            # W_hh^T (g columns x2)
                full2d((H, out_lanes)),        # fused output-head weights
                full2d((1, out_lanes)),        # fused output-head bias
            ],
            out_specs=full2d((T * B_pad, out_lanes)),
            scratch_shapes=[
                pltpu.VMEM((T * B_pad, H), jnp.float32),   # hidden-state history
            ],
        ),
        compiler_params=pltpu.CompilerParams(
            dimension_semantics=("arbitrary",),   # single grid step; recurrence is internal
        ),
    )(xproj, whh_s, w_out, b_out)

    # Split the slab, strip batch padding, back to PyTorch batch-first convention.
    out = out.reshape(T, B_pad, out_lanes)
    sensor = jnp.transpose(out[:, :B, 0:S], (1, 0, 2))        # (B, T, S)
    route = jnp.transpose(out[:, :B, S:S + R], (1, 0, 2))     # (B, T, R)
    return sensor, route


def ref_forward(z, params, seq_len):
    """Pure-JAX reference (PyTorch LSTM semantics, gate order i,f,g,o)."""
    B = z.shape[0]
    H = params["whh_t"].shape[0]

    def step(carry, _):
        h, c = carry
        gates = z @ params["wih_t"] + h @ params["whh_t"] + params["b"]
        i_g = jax.nn.sigmoid(gates[:, 0 * H:1 * H])
        f_g = jax.nn.sigmoid(gates[:, 1 * H:2 * H])
        g_g = jnp.tanh(gates[:, 2 * H:3 * H])
        o_g = jax.nn.sigmoid(gates[:, 3 * H:4 * H])
        c_new = f_g * c + i_g * g_g
        h_new = o_g * jnp.tanh(c_new)
        return (h_new, c_new), h_new

    init = (jnp.zeros((B, H), jnp.float32), jnp.zeros((B, H), jnp.float32))
    _, hs = lax.scan(step, init, None, length=seq_len)      # (T, B, H)
    hs = jnp.transpose(hs, (1, 0, 2))                        # (B, T, H)
    sensor = hs @ params["ws_t"] + params["bs"]
    logits = hs @ params["wr_t"] + params["br"]
    route = jax.nn.softmax(logits, axis=-1)
    return sensor, route


def init_params(key, sensor_dim, num_routes, num_hidden, num_latent):
    """Deterministic synthetic parameter init (PyTorch-like uniform scales)."""
    ks = jax.random.split(key, 9)
    k = 1.0 / np.sqrt(num_hidden)
    u = lambda kk, shape, scale: jax.random.uniform(kk, shape, jnp.float32, -scale, scale)
    params = {
        # LSTM weights, stored transposed (in_dim, 4*hidden) for right-multiply
        "wih_t": u(ks[0], (num_latent, 4 * num_hidden), k),
        "whh_t": u(ks[1], (num_hidden, 4 * num_hidden), k),
        "b": u(ks[2], (1, 4 * num_hidden), k) + u(ks[3], (1, 4 * num_hidden), k),  # b_ih + b_hh
        # heads
        "ws_t": u(ks[4], (num_hidden, sensor_dim), k),
        "bs": u(ks[5], (1, sensor_dim), k),
        "wr_t": u(ks[6], (num_hidden, num_routes), k),
        "br": u(ks[7], (1, num_routes), k),
        # start_input / out2latent only used by autoregressive_decode (not forward)
        "start_input": jax.random.normal(ks[8], (num_latent,), jnp.float32),
    }
    return params


if __name__ == "__main__":
    sensor_dim, num_routes, num_hidden, num_latent = 16, 8, 32, 32
    batch, seq_len = 2, 8

    key = jax.random.PRNGKey(0)
    kz, kp = jax.random.split(key)
    z = jax.random.normal(kz, (batch, num_latent), jnp.float32)
    params = init_params(kp, sensor_dim, num_routes, num_hidden, num_latent)

    sensor_recon, route_recon = autoregressive_decoder_forward(z, params, seq_len)
    sensor_recon = jax.block_until_ready(sensor_recon)
    route_recon = jax.block_until_ready(route_recon)

    sensor_ref, route_ref = ref_forward(z, params, seq_len)

    assert sensor_recon.shape == (batch, seq_len, sensor_dim)
    assert route_recon.shape == (batch, seq_len, num_routes)
    np.testing.assert_allclose(np.asarray(sensor_recon), np.asarray(sensor_ref),
                               rtol=1e-5, atol=1e-5)
    np.testing.assert_allclose(np.asarray(route_recon), np.asarray(route_ref),
                               rtol=1e-5, atol=1e-5)
    np.testing.assert_allclose(np.asarray(route_recon).sum(-1), 1.0, rtol=1e-5, atol=1e-5)

    print("KERNEL_OK")
</pallas_src>

<mosaic_0001>
module attributes {stable_mosaic.version = 11 : i64} {
  func.func @_decoder_kernel(%arg0: i32, %arg1: memref<8x128xf32, #tpu.memory_space<vmem>>, %arg2: memref<32x128xf32, #tpu.memory_space<vmem>>, %arg3: memref<32x128xf32, #tpu.memory_space<vmem>>, %arg4: memref<1x128xf32, #tpu.memory_space<vmem>>, %arg5: memref<64x128xf32, #tpu.memory_space<vmem>>, %arg6: memref<64x32xf32, #tpu.memory_space<vmem>>) attributes {dimension_semantics = [#tpu.dimension_semantics<arbitrary>], iteration_bounds = array<i64: 1>, scalar_prefetch = 0 : i64, scratch_operands = 1 : i64, tpu.core_type = #tpu.core_type<tc>, window_params = [{pipeline_mode = #tpu.pipeline_mode<synchronous>, transform_indices = @transform_0, window_bounds = array<i64: 8, 128>}, {pipeline_mode = #tpu.pipeline_mode<synchronous>, transform_indices = @transform_1, window_bounds = array<i64: 32, 128>}, {pipeline_mode = #tpu.pipeline_mode<synchronous>, transform_indices = @transform_2, window_bounds = array<i64: 32, 128>}, {pipeline_mode = #tpu.pipeline_mode<synchronous>, transform_indices = @transform_3, window_bounds = array<i64: 1, 128>}, {pipeline_mode = #tpu.pipeline_mode<synchronous>, transform_indices = @transform_4, window_bounds = array<i64: 64, 128>}]} {
    %c0 = arith.constant 0 : index
    %c0_0 = arith.constant 0 : index
    %0 = vector.load %arg1[%c0, %c0_0] : memref<8x128xf32, #tpu.memory_space<vmem>>, vector<8x128xf32>
    %c0_1 = arith.constant 0 : index
    %c0_2 = arith.constant 0 : index
    %1 = vector.load %arg2[%c0_1, %c0_2] : memref<32x128xf32, #tpu.memory_space<vmem>>, vector<32x128xf32>
    %cst = arith.constant 0.000000e+00 : f32
    %2 = vector.broadcast %cst : f32 to vector<8x32xf32>
    %c0_i32 = arith.constant 0 : i32
    %cst_3 = arith.constant dense<0.000000e+00> : vector<8x128xf32>
    %3 = tpu.matmul %2, %1, %cst_3 {dimension_numbers = #tpu.dot_dimension_numbers<[1], [0], [0], [1], [0, 0, 1, 1], [], []>} : vector<8x32xf32>, vector<32x128xf32>, vector<8x128xf32> -> vector<8x128xf32>
    %4 = arith.addf %0, %3 : vector<8x128xf32>
    %5 = arith.negf %4 : vector<8x128xf32>
    %6 = math.exp %5 : vector<8x128xf32>
    %cst_4 = arith.constant 1.000000e+00 : f32
    %7 = vector.broadcast %cst_4 : f32 to vector<8x128xf32>
    %8 = arith.addf %7, %6 : vector<8x128xf32>
    %9 = arith.divf %7, %8 : vector<8x128xf32>
    %10 = vector.extract_strided_slice %9 {offsets = [0, 0], sizes = [8, 32], strides = [1, 1]} : vector<8x128xf32> to vector<8x32xf32>
    %11 = vector.extract_strided_slice %9 {offsets = [0, 32], sizes = [8, 32], strides = [1, 1]} : vector<8x128xf32> to vector<8x32xf32>
    %12 = vector.extract_strided_slice %9 {offsets = [0, 64], sizes = [8, 32], strides = [1, 1]} : vector<8x128xf32> to vector<8x32xf32>
    %cst_5 = arith.constant 2.000000e+00 : f32
    %13 = vector.broadcast %cst_5 : f32 to vector<8x32xf32>
    %14 = arith.mulf %13, %12 : vector<8x32xf32>
    %cst_6 = arith.constant 1.000000e+00 : f32
    %15 = vector.broadcast %cst_6 : f32 to vector<8x32xf32>
    %16 = arith.subf %14, %15 : vector<8x32xf32>
    %17 = vector.extract_strided_slice %9 {offsets = [0, 96], sizes = [8, 32], strides = [1, 1]} : vector<8x128xf32> to vector<8x32xf32>
    %18 = arith.mulf %11, %2 : vector<8x32xf32>
    %19 = arith.mulf %10, %16 : vector<8x32xf32>
    %20 = arith.addf %18, %19 : vector<8x32xf32>
    %cst_7 = arith.constant 2.000000e+00 : f32
    %21 = vector.broadcast %cst_7 : f32 to vector<8x32xf32>
    %22 = arith.mulf %21, %20 : vector<8x32xf32>
    %23 = arith.negf %22 : vector<8x32xf32>
    %24 = math.exp %23 : vector<8x32xf32>
    %cst_8 = arith.constant 1.000000e+00 : f32
    %25 = vector.broadcast %cst_8 : f32 to vector<8x32xf32>
    %26 = arith.addf %25, %24 : vector<8x32xf32>
    %27 = arith.divf %25, %26 : vector<8x32xf32>
    %cst_9 = arith.constant 2.000000e+00 : f32
    %28 = vector.broadcast %cst_9 : f32 to vector<8x32xf32>
    %29 = arith.mulf %28, %27 : vector<8x32xf32>
    %cst_10 = arith.constant 1.000000e+00 : f32
    %30 = vector.broadcast %cst_10 : f32 to vector<8x32xf32>
    %31 = arith.subf %29, %30 : vector<8x32xf32>
    %32 = arith.mulf %17, %31 : vector<8x32xf32>
    %c8_i32 = arith.constant 8 : i32
    %33 = arith.muli %c0_i32, %c8_i32 : i32
    %34 = tpu.assume_multiple %33, 8 : i32
    %35 = arith.index_cast %34 : i32 to index
    %c0_11 = arith.constant 0 : index
    %36 = vector.load %arg6[%35, %c0_11] : memref<64x32xf32, #tpu.memory_space<vmem>>, vector<8x32xf32>
    tpu.vector_store %arg6[%35, %c0_11], %32 {strides = array<i32>} : memref<64x32xf32, #tpu.memory_space<vmem>>, vector<8x32xf32>,
    %c1_i32 = arith.constant 1 : i32
    %cst_12 = arith.constant dense<0.000000e+00> : vector<8x128xf32>
    %37 = tpu.matmul %32, %1, %cst_12 {dimension_numbers = #tpu.dot_dimension_numbers<[1], [0], [0], [1], [0, 0, 1, 1], [], []>} : vector<8x32xf32>, vector<32x128xf32>, vector<8x128xf32> -> vector<8x128xf32>
    %38 = arith.addf %0, %37 : vector<8x128xf32>
    %39 = arith.negf %38 : vector<8x128xf32>
    %40 = math.exp %39 : vector<8x128xf32>
    %cst_13 = arith.constant 1.000000e+00 : f32
    %41 = vector.broadcast %cst_13 : f32 to vector<8x128xf32>
    %42 = arith.addf %41, %40 : vector<8x128xf32>
    %43 = arith.divf %41, %42 : vector<8x128xf32>
    %44 = vector.extract_strided_slice %43 {offsets = [0, 0], sizes = [8, 32], strides = [1, 1]} : vector<8x128xf32> to vector<8x32xf32>
    %45 = vector.extract_strided_slice %43 {offsets = [0, 32], sizes = [8, 32], strides = [1, 1]} : vector<8x128xf32> to vector<8x32xf32>
    %46 = vector.extract_strided_slice %43 {offsets = [0, 64], sizes = [8, 32], strides = [1, 1]} : vector<8x128xf32> to vector<8x32xf32>
    %cst_14 = arith.constant 2.000000e+00 : f32
    %47 = vector.broadcast %cst_14 : f32 to vector<8x32xf32>
    %48 = arith.mulf %47, %46 : vector<8x32xf32>
    %cst_15 = arith.constant 1.000000e+00 : f32
    %49 = vector.broadcast %cst_15 : f32 to vector<8x32xf32>
    %50 = arith.subf %48, %49 : vector<8x32xf32>
    %51 = vector.extract_strided_slice %43 {offsets = [0, 96], sizes = [8, 32], strides = [1, 1]} : vector<8x128xf32> to vector<8x32xf32>
    %52 = arith.mulf %45, %20 : vector<8x32xf32>
    %53 = arith.mulf %44, %50 : vector<8x32xf32>
    %54 = arith.addf %52, %53 : vector<8x32xf32>
    %cst_16 = arith.constant 2.000000e+00 : f32
    %55 = vector.broadcast %cst_16 : f32 to vector<8x32xf32>
    %56 = arith.mulf %55, %54 : vector<8x32xf32>
    %57 = arith.negf %56 : vector<8x32xf32>
    %58 = math.exp %57 : vector<8x32xf32>
    %cst_17 = arith.constant 1.000000e+00 : f32
    %59 = vector.broadcast %cst_17 : f32 to vector<8x32xf32>
    %60 = arith.addf %59, %58 : vector<8x32xf32>
    %61 = arith.divf %59, %60 : vector<8x32xf32>
    %cst_18 = arith.constant 2.000000e+00 : f32
    %62 = vector.broadcast %cst_18 : f32 to vector<8x32xf32>
    %63 = arith.mulf %62, %61 : vector<8x32xf32>
    %cst_19 = arith.constant 1.000000e+00 : f32
    %64 = vector.broadcast %cst_19 : f32 to vector<8x32xf32>
    %65 = arith.subf %63, %64 : vector<8x32xf32>
    %66 = arith.mulf %51, %65 : vector<8x32xf32>
    %c8_i32_20 = arith.constant 8 : i32
    %67 = arith.muli %c1_i32, %c8_i32_20 : i32
    %68 = tpu.assume_multiple %67, 8 : i32
    %69 = arith.index_cast %68 : i32 to index
    %c0_21 = arith.constant 0 : index
    %70 = vector.load %arg6[%69, %c0_21] : memref<64x32xf32, #tpu.memory_space<vmem>>, vector<8x32xf32>
    tpu.vector_store %arg6[%69, %c0_21], %66 {strides = array<i32>} : memref<64x32xf32, #tpu.memory_space<vmem>>, vector<8x32xf32>,
    %c2_i32 = arith.constant 2 : i32
    %cst_22 = arith.constant dense<0.000000e+00> : vector<8x128xf32>
    %71 = tpu.matmul %66, %1, %cst_22 {dimension_numbers = #tpu.dot_dimension_numbers<[1], [0], [0], [1], [0, 0, 1, 1], [], []>} : vector<8x32xf32>, vector<32x128xf32>, vector<8x128xf32> -> vector<8x128xf32>
    %72 = arith.addf %0, %71 : vector<8x128xf32>
    %73 = arith.negf %72 : vector<8x128xf32>
    %74 = math.exp %73 : vector<8x128xf32>
    %cst_23 = arith.constant 1.000000e+00 : f32
    %75 = vector.broadcast %cst_23 : f32 to vector<8x128xf32>
    %76 = arith.addf %75, %74 : vector<8x128xf32>
    %77 = arith.divf %75, %76 : vector<8x128xf32>
    %78 = vector.extract_strided_slice %77 {offsets = [0, 0], sizes = [8, 32], strides = [1, 1]} : vector<8x128xf32> to vector<8x32xf32>
    %79 = vector.extract_strided_slice %77 {offsets = [0, 32], sizes = [8, 32], strides = [1, 1]} : vector<8x128xf32> to vector<8x32xf32>
    %80 = vector.extract_strided_slice %77 {offsets = [0, 64], sizes = [8, 32], strides = [1, 1]} : vector<8x128xf32> to vector<8x32xf32>
    %cst_24 = arith.constant 2.000000e+00 : f32
    %81 = vector.broadcast %cst_24 : f32 to vector<8x32xf32>
    %82 = arith.mulf %81, %80 : vector<8x32xf32>
    %cst_25 = arith.constant 1.000000e+00 : f32
    %83 = vector.broadcast %cst_25 : f32 to vector<8x32xf32>
    %84 = arith.subf %82, %83 : vector<8x32xf32>
    %85 = vector.extract_strided_slice %77 {offsets = [0, 96], sizes = [8, 32], strides = [1, 1]} : vector<8x128xf32> to vector<8x32xf32>
    %86 = arith.mulf %79, %54 : vector<8x32xf32>
    %87 = arith.mulf %78, %84 : vector<8x32xf32>
    %88 = arith.addf %86, %87 : vector<8x32xf32>
    %cst_26 = arith.constant 2.000000e+00 : f32
    %89 = vector.broadcast %cst_26 : f32 to vector<8x32xf32>
    %90 = arith.mulf %89, %88 : vector<8x32xf32>
    %91 = arith.negf %90 : vector<8x32xf32>
    %92 = math.exp %91 : vector<8x32xf32>
    %cst_27 = arith.constant 1.000000e+00 : f32
    %93 = vector.broadcast %cst_27 : f32 to vector<8x32xf32>
    %94 = arith.addf %93, %92 : vector<8x32xf32>
    %95 = arith.divf %93, %94 : vector<8x32xf32>
    %cst_28 = arith.constant 2.000000e+00 : f32
    %96 = vector.broadcast %cst_28 : f32 to vector<8x32xf32>
    %97 = arith.mulf %96, %95 : vector<8x32xf32>
    %cst_29 = arith.constant 1.000000e+00 : f32
    %98 = vector.broadcast %cst_29 : f32 to vector<8x32xf32>
    %99 = arith.subf %97, %98 : vector<8x32xf32>
    %100 = arith.mulf %85, %99 : vector<8x32xf32>
    %c8_i32_30 = arith.constant 8 : i32
    %101 = arith.muli %c2_i32, %c8_i32_30 : i32
    %102 = tpu.assume_multiple %101, 8 : i32
    %103 = arith.index_cast %102 : i32 to index
    %c0_31 = arith.constant 0 : index
    %104 = vector.load %arg6[%103, %c0_31] : memref<64x32xf32, #tpu.memory_space<vmem>>, vector<8x32xf32>
    tpu.vector_store %arg6[%103, %c0_31], %100 {strides = array<i32>} : memref<64x32xf32, #tpu.memory_space<vmem>>, vector<8x32xf32>,
    %c3_i32 = arith.constant 3 : i32
    %cst_32 = arith.constant dense<0.000000e+00> : vector<8x128xf32>
    %105 = tpu.matmul %100, %1, %cst_32 {dimension_numbers = #tpu.dot_dimension_numbers<[1], [0], [0], [1], [0, 0, 1, 1], [], []>} : vector<8x32xf32>, vector<32x128xf32>, vector<8x128xf32> -> vector<8x128xf32>
    %106 = arith.addf %0, %105 : vector<8x128xf32>
    %107 = arith.negf %106 : vector<8x128xf32>
    %108 = math.exp %107 : vector<8x128xf32>
    %cst_33 = arith.constant 1.000000e+00 : f32
    %109 = vector.broadcast %cst_33 : f32 to vector<8x128xf32>
    %110 = arith.addf %109, %108 : vector<8x128xf32>
    %111 = arith.divf %109, %110 : vector<8x128xf32>
    %112 = vector.extract_strided_slice %111 {offsets = [0, 0], sizes = [8, 32], strides = [1, 1]} : vector<8x128xf32> to vector<8x32xf32>
    %113 = vector.extract_strided_slice %111 {offsets = [0, 32], sizes = [8, 32], strides = [1, 1]} : vector<8x128xf32> to vector<8x32xf32>
    %114 = vector.extract_strided_slice %111 {offsets = [0, 64], sizes = [8, 32], strides = [1, 1]} : vector<8x128xf32> to vector<8x32xf32>
    %cst_34 = arith.constant 2.000000e+00 : f32
    %115 = vector.broadcast %cst_34 : f32 to vector<8x32xf32>
    %116 = arith.mulf %115, %114 : vector<8x32xf32>
    %cst_35 = arith.constant 1.000000e+00 : f32
    %117 = vector.broadcast %cst_35 : f32 to vector<8x32xf32>
    %118 = arith.subf %116, %117 : vector<8x32xf32>
    %119 = vector.extract_strided_slice %111 {offsets = [0, 96], sizes = [8, 32], strides = [1, 1]} : vector<8x128xf32> to vector<8x32xf32>
    %120 = arith.mulf %113, %88 : vector<8x32xf32>
    %121 = arith.mulf %112, %118 : vector<8x32xf32>
    %122 = arith.addf %120, %121 : vector<8x32xf32>
    %cst_36 = arith.constant 2.000000e+00 : f32
    %123 = vector.broadcast %cst_36 : f32 to vector<8x32xf32>
    %124 = arith.mulf %123, %122 : vector<8x32xf32>
    %125 = arith.negf %124 : vector<8x32xf32>
    %126 = math.exp %125 : vector<8x32xf32>
    %cst_37 = arith.constant 1.000000e+00 : f32
    %127 = vector.broadcast %cst_37 : f32 to vector<8x32xf32>
    %128 = arith.addf %127, %126 : vector<8x32xf32>
    %129 = arith.divf %127, %128 : vector<8x32xf32>
    %cst_38 = arith.constant 2.000000e+00 : f32
    %130 = vector.broadcast %cst_38 : f32 to vector<8x32xf32>
    %131 = arith.mulf %130, %129 : vector<8x32xf32>
    %cst_39 = arith.constant 1.000000e+00 : f32
    %132 = vector.broadcast %cst_39 : f32 to vector<8x32xf32>
    %133 = arith.subf %131, %132 : vector<8x32xf32>
    %134 = arith.mulf %119, %133 : vector<8x32xf32>
    %c8_i32_40 = arith.constant 8 : i32
    %135 = arith.muli %c3_i32, %c8_i32_40 : i32
    %136 = tpu.assume_multiple %135, 8 : i32
    %137 = arith.index_cast %136 : i32 to index
    %c0_41 = arith.constant 0 : index
    %138 = vector.load %arg6[%137, %c0_41] : memref<64x32xf32, #tpu.memory_space<vmem>>, vector<8x32xf32>
    tpu.vector_store %arg6[%137, %c0_41], %134 {strides = array<i32>} : memref<64x32xf32, #tpu.memory_space<vmem>>, vector<8x32xf32>,
    %c4_i32 = arith.constant 4 : i32
    %cst_42 = arith.constant dense<0.000000e+00> : vector<8x128xf32>
    %139 = tpu.matmul %134, %1, %cst_42 {dimension_numbers = #tpu.dot_dimension_numbers<[1], [0], [0], [1], [0, 0, 1, 1], [], []>} : vector<8x32xf32>, vector<32x128xf32>, vector<8x128xf32> -> vector<8x128xf32>
    %140 = arith.addf %0, %139 : vector<8x128xf32>
    %141 = arith.negf %140 : vector<8x128xf32>
    %142 = math.exp %141 : vector<8x128xf32>
    %cst_43 = arith.constant 1.000000e+00 : f32
    %143 = vector.broadcast %cst_43 : f32 to vector<8x128xf32>
    %144 = arith.addf %143, %142 : vector<8x128xf32>
    %145 = arith.divf %143, %144 : vector<8x128xf32>
    %146 = vector.extract_strided_slice %145 {offsets = [0, 0], sizes = [8, 32], strides = [1, 1]} : vector<8x128xf32> to vector<8x32xf32>
    %147 = vector.extract_strided_slice %145 {offsets = [0, 32], sizes = [8, 32], strides = [1, 1]} : vector<8x128xf32> to vector<8x32xf32>
    %148 = vector.extract_strided_slice %145 {offsets = [0, 64], sizes = [8, 32], strides = [1, 1]} : vector<8x128xf32> to vector<8x32xf32>
    %cst_44 = arith.constant 2.000000e+00 : f32
    %149 = vector.broadcast %cst_44 : f32 to vector<8x32xf32>
    %150 = arith.mulf %149, %148 : vector<8x32xf32>
    %cst_45 = arith.constant 1.000000e+00 : f32
    %151 = vector.broadcast %cst_45 : f32 to vector<8x32xf32>
    %152 = arith.subf %150, %151 : vector<8x32xf32>
    %153 = vector.extract_strided_slice %145 {offsets = [0, 96], sizes = [8, 32], strides = [1, 1]} : vector<8x128xf32> to vector<8x32xf32>
    %154 = arith.mulf %147, %122 : vector<8x32xf32>
    %155 = arith.mulf %146, %152 : vector<8x32xf32>
    %156 = arith.addf %154, %155 : vector<8x32xf32>
    %cst_46 = arith.constant 2.000000e+00 : f32
    %157 = vector.broadcast %cst_46 : f32 to vector<8x32xf32>
    %158 = arith.mulf %157, %156 : vector<8x32xf32>
    %159 = arith.negf %158 : vector<8x32xf32>
    %160 = math.exp %159 : vector<8x32xf32>
    %cst_47 = arith.constant 1.000000e+00 : f32
    %161 = vector.broadcast %cst_47 : f32 to vector<8x32xf32>
    %162 = arith.addf %161, %160 : vector<8x32xf32>
    %163 = arith.divf %161, %162 : vector<8x32xf32>
    %cst_48 = arith.constant 2.000000e+00 : f32
    %164 = vector.broadcast %cst_48 : f32 to vector<8x32xf32>
    %165 = arith.mulf %164, %163 : vector<8x32xf32>
    %cst_49 = arith.constant 1.000000e+00 : f32
    %166 = vector.broadcast %cst_49 : f32 to vector<8x32xf32>
    %167 = arith.subf %165, %166 : vector<8x32xf32>
    %168 = arith.mulf %153, %167 : vector<8x32xf32>
    %c8_i32_50 = arith.constant 8 : i32
    %169 = arith.muli %c4_i32, %c8_i32_50 : i32
    %170 = tpu.assume_multiple %169, 8 : i32
    %171 = arith.index_cast %170 : i32 to index
    %c0_51 = arith.constant 0 : index
    %172 = vector.load %arg6[%171, %c0_51] : memref<64x32xf32, #tpu.memory_space<vmem>>, vector<8x32xf32>
    tpu.vector_store %arg6[%171, %c0_51], %168 {strides = array<i32>} : memref<64x32xf32, #tpu.memory_space<vmem>>, vector<8x32xf32>,
    %c5_i32 = arith.constant 5 : i32
    %cst_52 = arith.constant dense<0.000000e+00> : vector<8x128xf32>
    %173 = tpu.matmul %168, %1, %cst_52 {dimension_numbers = #tpu.dot_dimension_numbers<[1], [0], [0], [1], [0, 0, 1, 1], [], []>} : vector<8x32xf32>, vector<32x128xf32>, vector<8x128xf32> -> vector<8x128xf32>
    %174 = arith.addf %0, %173 : vector<8x128xf32>
    %175 = arith.negf %174 : vector<8x128xf32>
    %176 = math.exp %175 : vector<8x128xf32>
    %cst_53 = arith.constant 1.000000e+00 : f32
    %177 = vector.broadcast %cst_53 : f32 to vector<8x128xf32>
    %178 = arith.addf %177, %176 : vector<8x128xf32>
    %179 = arith.divf %177, %178 : vector<8x128xf32>
    %180 = vector.extract_strided_slice %179 {offsets = [0, 0], sizes = [8, 32], strides = [1, 1]} : vector<8x128xf32> to vector<8x32xf32>
    %181 = vector.extract_strided_slice %179 {offsets = [0, 32], sizes = [8, 32], strides = [1, 1]} : vector<8x128xf32> to vector<8x32xf32>
    %182 = vector.extract_strided_slice %179 {offsets = [0, 64], sizes = [8, 32], strides = [1, 1]} : vector<8x128xf32> to vector<8x32xf32>
    %cst_54 = arith.constant 2.000000e+00 : f32
    %183 = vector.broadcast %cst_54 : f32 to vector<8x32xf32>
    %184 = arith.mulf %183, %182 : vector<8x32xf32>
    %cst_55 = arith.constant 1.000000e+00 : f32
    %185 = vector.broadcast %cst_55 : f32 to vector<8x32xf32>
    %186 = arith.subf %184, %185 : vector<8x32xf32>
    %187 = vector.extract_strided_slice %179 {offsets = [0, 96], sizes = [8, 32], strides = [1, 1]} : vector<8x128xf32> to vector<8x32xf32>
    %188 = arith.mulf %181, %156 : vector<8x32xf32>
    %189 = arith.mulf %180, %186 : vector<8x32xf32>
    %190 = arith.addf %188, %189 : vector<8x32xf32>
    %cst_56 = arith.constant 2.000000e+00 : f32
    %191 = vector.broadcast %cst_56 : f32 to vector<8x32xf32>
    %192 = arith.mulf %191, %190 : vector<8x32xf32>
    %193 = arith.negf %192 : vector<8x32xf32>
    %194 = math.exp %193 : vector<8x32xf32>
    %cst_57 = arith.constant 1.000000e+00 : f32
    %195 = vector.broadcast %cst_57 : f32 to vector<8x32xf32>
    %196 = arith.addf %195, %194 : vector<8x32xf32>
    %197 = arith.divf %195, %196 : vector<8x32xf32>
    %cst_58 = arith.constant 2.000000e+00 : f32
    %198 = vector.broadcast %cst_58 : f32 to vector<8x32xf32>
    %199 = arith.mulf %198, %197 : vector<8x32xf32>
    %cst_59 = arith.constant 1.000000e+00 : f32
    %200 = vector.broadcast %cst_59 : f32 to vector<8x32xf32>
    %201 = arith.subf %199, %200 : vector<8x32xf32>
    %202 = arith.mulf %187, %201 : vector<8x32xf32>
    %c8_i32_60 = arith.constant 8 : i32
    %203 = arith.muli %c5_i32, %c8_i32_60 : i32
    %204 = tpu.assume_multiple %203, 8 : i32
    %205 = arith.index_cast %204 : i32 to index
    %c0_61 = arith.constant 0 : index
    %206 = vector.load %arg6[%205, %c0_61] : memref<64x32xf32, #tpu.memory_space<vmem>>, vector<8x32xf32>
    tpu.vector_store %arg6[%205, %c0_61], %202 {strides = array<i32>} : memref<64x32xf32, #tpu.memory_space<vmem>>, vector<8x32xf32>,
    %c6_i32 = arith.constant 6 : i32
    %cst_62 = arith.constant dense<0.000000e+00> : vector<8x128xf32>
    %207 = tpu.matmul %202, %1, %cst_62 {dimension_numbers = #tpu.dot_dimension_numbers<[1], [0], [0], [1], [0, 0, 1, 1], [], []>} : vector<8x32xf32>, vector<32x128xf32>, vector<8x128xf32> -> vector<8x128xf32>
    %208 = arith.addf %0, %207 : vector<8x128xf32>
    %209 = arith.negf %208 : vector<8x128xf32>
    %210 = math.exp %209 : vector<8x128xf32>
    %cst_63 = arith.constant 1.000000e+00 : f32
    %211 = vector.broadcast %cst_63 : f32 to vector<8x128xf32>
    %212 = arith.addf %211, %210 : vector<8x128xf32>
    %213 = arith.divf %211, %212 : vector<8x128xf32>
    %214 = vector.extract_strided_slice %213 {offsets = [0, 0], sizes = [8, 32], strides = [1, 1]} : vector<8x128xf32> to vector<8x32xf32>
    %215 = vector.extract_strided_slice %213 {offsets = [0, 32], sizes = [8, 32], strides = [1, 1]} : vector<8x128xf32> to vector<8x32xf32>
    %216 = vector.extract_strided_slice %213 {offsets = [0, 64], sizes = [8, 32], strides = [1, 1]} : vector<8x128xf32> to vector<8x32xf32>
    %cst_64 = arith.constant 2.000000e+00 : f32
    %217 = vector.broadcast %cst_64 : f32 to vector<8x32xf32>
    %218 = arith.mulf %217, %216 : vector<8x32xf32>
    %cst_65 = arith.constant 1.000000e+00 : f32
    %219 = vector.broadcast %cst_65 : f32 to vector<8x32xf32>
    %220 = arith.subf %218, %219 : vector<8x32xf32>
    %221 = vector.extract_strided_slice %213 {offsets = [0, 96], sizes = [8, 32], strides = [1, 1]} : vector<8x128xf32> to vector<8x32xf32>
    %222 = arith.mulf %215, %190 : vector<8x32xf32>
    %223 = arith.mulf %214, %220 : vector<8x32xf32>
    %224 = arith.addf %222, %223 : vector<8x32xf32>
    %cst_66 = arith.constant 2.000000e+00 : f32
    %225 = vector.broadcast %cst_66 : f32 to vector<8x32xf32>
    %226 = arith.mulf %225, %224 : vector<8x32xf32>
    %227 = arith.negf %226 : vector<8x32xf32>
    %228 = math.exp %227 : vector<8x32xf32>
    %cst_67 = arith.constant 1.000000e+00 : f32
    %229 = vector.broadcast %cst_67 : f32 to vector<8x32xf32>
    %230 = arith.addf %229, %228 : vector<8x32xf32>
    %231 = arith.divf %229, %230 : vector<8x32xf32>
    %cst_68 = arith.constant 2.000000e+00 : f32
    %232 = vector.broadcast %cst_68 : f32 to vector<8x32xf32>
    %233 = arith.mulf %232, %231 : vector<8x32xf32>
    %cst_69 = arith.constant 1.000000e+00 : f32
    %234 = vector.broadcast %cst_69 : f32 to vector<8x32xf32>
    %235 = arith.subf %233, %234 : vector<8x32xf32>
    %236 = arith.mulf %221, %235 : vector<8x32xf32>
    %c8_i32_70 = arith.constant 8 : i32
    %237 = arith.muli %c6_i32, %c8_i32_70 : i32
    %238 = tpu.assume_multiple %237, 8 : i32
    %239 = arith.index_cast %238 : i32 to index
    %c0_71 = arith.constant 0 : index
    %240 = vector.load %arg6[%239, %c0_71] : memref<64x32xf32, #tpu.memory_space<vmem>>, vector<8x32xf32>
    tpu.vector_store %arg6[%239, %c0_71], %236 {strides = array<i32>} : memref<64x32xf32, #tpu.memory_space<vmem>>, vector<8x32xf32>,
    %c7_i32 = arith.constant 7 : i32
    %cst_72 = arith.constant dense<0.000000e+00> : vector<8x128xf32>
    %241 = tpu.matmul %236, %1, %cst_72 {dimension_numbers = #tpu.dot_dimension_numbers<[1], [0], [0], [1], [0, 0, 1, 1], [], []>} : vector<8x32xf32>, vector<32x128xf32>, vector<8x128xf32> -> vector<8x128xf32>
    %242 = arith.addf %0, %241 : vector<8x128xf32>
    %243 = arith.negf %242 : vector<8x128xf32>
    %244 = math.exp %243 : vector<8x128xf32>
    %cst_73 = arith.constant 1.000000e+00 : f32
    %245 = vector.broadcast %cst_73 : f32 to vector<8x128xf32>
    %246 = arith.addf %245, %244 : vector<8x128xf32>
    %247 = arith.divf %245, %246 : vector<8x128xf32>
    %248 = vector.extract_strided_slice %247 {offsets = [0, 0], sizes = [8, 32], strides = [1, 1]} : vector<8x128xf32> to vector<8x32xf32>
    %249 = vector.extract_strided_slice %247 {offsets = [0, 32], sizes = [8, 32], strides = [1, 1]} : vector<8x128xf32> to vector<8x32xf32>
    %250 = vector.extract_strided_slice %247 {offsets = [0, 64], sizes = [8, 32], strides = [1, 1]} : vector<8x128xf32> to vector<8x32xf32>
    %cst_74 = arith.constant 2.000000e+00 : f32
    %251 = vector.broadcast %cst_74 : f32 to vector<8x32xf32>
    %252 = arith.mulf %251, %250 : vector<8x32xf32>
    %cst_75 = arith.constant 1.000000e+00 : f32
    %253 = vector.broadcast %cst_75 : f32 to vector<8x32xf32>
    %254 = arith.subf %252, %253 : vector<8x32xf32>
    %255 = vector.extract_strided_slice %247 {offsets = [0, 96], sizes = [8, 32], strides = [1, 1]} : vector<8x128xf32> to vector<8x32xf32>
    %256 = arith.mulf %249, %224 : vector<8x32xf32>
    %257 = arith.mulf %248, %254 : vector<8x32xf32>
    %258 = arith.addf %256, %257 : vector<8x32xf32>
    %cst_76 = arith.constant 2.000000e+00 : f32
    %259 = vector.broadcast %cst_76 : f32 to vector<8x32xf32>
    %260 = arith.mulf %259, %258 : vector<8x32xf32>
    %261 = arith.negf %260 : vector<8x32xf32>
    %262 = math.exp %261 : vector<8x32xf32>
    %cst_77 = arith.constant 1.000000e+00 : f32
    %263 = vector.broadcast %cst_77 : f32 to vector<8x32xf32>
    %264 = arith.addf %263, %262 : vector<8x32xf32>
    %265 = arith.divf %263, %264 : vector<8x32xf32>
    %cst_78 = arith.constant 2.000000e+00 : f32
    %266 = vector.broadcast %cst_78 : f32 to vector<8x32xf32>
    %267 = arith.mulf %266, %265 : vector<8x32xf32>
    %cst_79 = arith.constant 1.000000e+00 : f32
    %268 = vector.broadcast %cst_79 : f32 to vector<8x32xf32>
    %269 = arith.subf %267, %268 : vector<8x32xf32>
    %270 = arith.mulf %255, %269 : vector<8x32xf32>
    %c8_i32_80 = arith.constant 8 : i32
    %271 = arith.muli %c7_i32, %c8_i32_80 : i32
    %272 = tpu.assume_multiple %271, 8 : i32
    %273 = arith.index_cast %272 : i32 to index
    %c0_81 = arith.constant 0 : index
    %274 = vector.load %arg6[%273, %c0_81] : memref<64x32xf32, #tpu.memory_space<vmem>>, vector<8x32xf32>
    tpu.vector_store %arg6[%273, %c0_81], %270 {strides = array<i32>} : memref<64x32xf32, #tpu.memory_space<vmem>>, vector<8x32xf32>,
    %c8_i32_82 = arith.constant 8 : i32
    %c0_83 = arith.constant 0 : index
    %c0_84 = arith.constant 0 : index
    %275 = vector.load %arg6[%c0_83, %c0_84] : memref<64x32xf32, #tpu.memory_space<vmem>>, vector<64x32xf32>
    %c0_85 = arith.constant 0 : index
    %c0_86 = arith.constant 0 : index
    %276 = vector.load %arg3[%c0_85, %c0_86] : memref<32x128xf32, #tpu.memory_space<vmem>>, vector<32x128xf32>
    %cst_87 = arith.constant dense<0.000000e+00> : vector<64x128xf32>
    %277 = tpu.matmul %275, %276, %cst_87 {dimension_numbers = #tpu.dot_dimension_numbers<[1], [0], [0], [1], [0, 0, 1, 1], [], []>} : vector<64x32xf32>, vector<32x128xf32>, vector<64x128xf32> -> vector<64x128xf32>
    %c0_88 = arith.constant 0 : index
    %c0_89 = arith.constant 0 : index
    %278 = vector.load %arg4[%c0_88, %c0_89] : memref<1x128xf32, #tpu.memory_space<vmem>>, vector<1x128xf32>
    %279 = vector.broadcast %278 : vector<1x128xf32> to vector<64x128xf32>
    %280 = arith.addf %277, %279 : vector<64x128xf32>
    %281 = tpu.iota {dimensions = array<i32: 1>} : vector<64x128xi32>
    %c16_i32 = arith.constant 16 : i32
    %282 = vector.broadcast %c16_i32 : i32 to vector<64x128xi32>
    %283 = arith.cmpi sge, %281, %282 : vector<64x128xi32>
    %c24_i32 = arith.constant 24 : i32
    %284 = vector.broadcast %c24_i32 : i32 to vector<64x128xi32>
    %285 = arith.cmpi slt, %281, %284 : vector<64x128xi32>
    %286 = arith.andi %283, %285 : vector<64x128xi1>
    %cst_90 = arith.constant -1.000000e+30 : f32
    %287 = vector.broadcast %cst_90 : f32 to vector<64x128xf32>
    %288 = arith.select %286, %280, %287 : vector<64x128xi1>, vector<64x128xf32>
    %cst_91 = arith.constant dense<0xFF800000> : vector<64xf32>
    %289 = vector.multi_reduction <maximumf>, %288, %cst_91 [1] : vector<64x128xf32> to vector<64xf32>
    %290 = vector.shape_cast %289 : vector<64xf32> to vector<64x1xf32>
    %291 = vector.broadcast %290 : vector<64x1xf32> to vector<64x128xf32>
    %292 = arith.subf %280, %291 : vector<64x128xf32>
    %cst_92 = arith.constant 0.000000e+00 : f32
    %293 = vector.broadcast %cst_92 : f32 to vector<64x128xf32>
    %294 = arith.select %286, %292, %293 : vector<64x128xi1>, vector<64x128xf32>
    %295 = math.exp %294 : vector<64x128xf32>
    %cst_93 = arith.constant 0.000000e+00 : f32
    %296 = vector.broadcast %cst_93 : f32 to vector<64x128xf32>
    %297 = arith.select %286, %295, %296 : vector<64x128xi1>, vector<64x128xf32>
    %cst_94 = arith.constant dense<0.000000e+00> : vector<64xf32>
    %298 = vector.multi_reduction <add>, %297, %cst_94 [1] : vector<64x128xf32> to vector<64xf32>
    %299 = vector.shape_cast %298 : vector<64xf32> to vector<64x1xf32>
    %300 = tpu.reciprocal %299 {approx = true} : vector<64x1xf32> -> vector<64x1xf32>
    %301 = arith.mulf %299, %300 : vector<64x1xf32>
    %cst_95 = arith.constant 2.000000e+00 : f32
    %302 = vector.broadcast %cst_95 : f32 to vector<64x1xf32>
    %303 = arith.subf %302, %301 : vector<64x1xf32>
    %304 = arith.mulf %300, %303 : vector<64x1xf32>
    %305 = vector.broadcast %304 : vector<64x1xf32> to vector<64x128xf32>
    %306 = arith.mulf %297, %305 : vector<64x128xf32>
    %307 = arith.select %286, %306, %280 : vector<64x128xi1>, vector<64x128xf32>
    %c0_96 = arith.constant 0 : index
    %c0_97 = arith.constant 0 : index
    %308 = vector.load %arg5[%c0_96, %c0_97] : memref<64x128xf32, #tpu.memory_space<vmem>>, vector<64x128xf32>
    tpu.vector_store %arg5[%c0_96, %c0_97], %307 {strides = array<i32>} : memref<64x128xf32, #tpu.memory_space<vmem>>, vector<64x128xf32>,
    return
  }
  func.func @transform_0(%arg0: i32) -> (i32, i32) {
    %c0_i32 = arith.constant 0 : i32
    %c0_i32_0 = arith.constant 0 : i32
    %c0_i32_1 = arith.constant 0 : i32
    return %c0_i32, %c0_i32_0 : i32, i32
  }
  func.func @transform_1(%arg0: i32) -> (i32, i32) {
    %c0_i32 = arith.constant 0 : i32
    %c0_i32_0 = arith.constant 0 : i32
    %c0_i32_1 = arith.constant 0 : i32
    return %c0_i32, %c0_i32_0 : i32, i32
  }
  func.func @transform_2(%arg0: i32) -> (i32, i32) {
    %c0_i32 = arith.constant 0 : i32
    %c0_i32_0 = arith.constant 0 : i32
    %c0_i32_1 = arith.constant 0 : i32
    return %c0_i32, %c0_i32_0 : i32, i32
  }
  func.func @transform_3(%arg0: i32) -> (i32, i32) {
    %c0_i32 = arith.constant 0 : i32
    %c0_i32_0 = arith.constant 0 : i32
    %c0_i32_1 = arith.constant 0 : i32
    return %c0_i32, %c0_i32_0 : i32, i32
  }
  func.func @transform_4(%arg0: i32) -> (i32, i32) {
    %c0_i32 = arith.constant 0 : i32
    %c0_i32_0 = arith.constant 0 : i32
    %c0_i32_1 = arith.constant 0 : i32
    return %c0_i32, %c0_i32_0 : i32, i32
  }
}

</mosaic_0001>

<bundles_post_ra>
// kernel: tpu_custom_call.1
= control target key start
LH: loop header
LB: loop body
LE: loop exit
PB: predicated region body
PF: predicated region fallthrough
CT: control target
= control target key end

     0   :  { %9 = vsyncpa [#allocation4], 0  ;;  %s2083_s0 = inlined_call_operand.hbm [shape: f32[8,128], index: 0, kind: input, shape index: {}]   ;;  %s2084_s1 = inlined_call_operand.hbm [shape: f32[32,128], index: 1, kind: input, shape index: {}]   ;;  %s2085_s2 = inlined_call_operand.hbm [shape: f32[32,128], index: 2, kind: input, shape index: {}]   ;;  %s2086_s3 = inlined_call_operand.vmem [shape: f32[1,128], index: 3, kind: input, shape index: {}]   ;;  %s2087_s4 = inlined_call_operand.hbm [shape: f32[64,128], index: 4, kind: output, shape index: {}]  }
   0x1   :  { %10 = vsyncpa [#allocation7], 0 }
   0x2   :  { %11 = vsyncpa [#allocation5], 0  ;;  %s1731_s15 = smov [#allocation6]   ;;  %s1637_s19 = scalar_lea.hbm %s2084_s1, 512 }
   0x3   :  { %s27_s16 = sshll.u32 %s1731_s15, 4  ;;  %p1638_p0 = scmp.ne.s32.totalorder %s2084_s1, %s1637_s19  ;;  %s28_s16 = int_to_ptr.vmem [resolvable:$true] %s27_s16 }
   0x4   :  { %p1641_p1 = scmp.lt.u32.totalorder %s1637_s19, %s2084_s1 }
   0x6   :  { %p1643_p2 = pnand %p1641_p1, %p1638_p0 }
   0x8   :  { %1646 = shalt.err (!%p1643_p2)
}
   0x9   :  { %s1647_s24 = scalar_lea.vmem %s28_s16, 512  ;;  %p1652_p4 = scmp.lt.s32.totalorder %s28_s16, %s28_s16 }
   0xa   :  { %p1648_p3 = scmp.ne.s32.totalorder %s28_s16, %s1647_s24  ;;  %p1653_p5 = scmp.lt.s32.totalorder %s1647_s24, %s1647_s24 }
   0xc   :  { %p1654_p6 = por %p1653_p5, %p1652_p4 }
   0xe   :  { %p1655_p7 = pnand %p1654_p6, %p1648_p3 }
  0x10   :  { %1658 = shalt.err (!%p1655_p7)
}
  0x11   :  { %s1732_s25 = smov 128   ;;  %s1733_s26 = smov 8  }
  0x12   :  { %33 = dma.hbm_to_vmem [thread:$0]  %s2084_s1, 512, %s28_s16, [#allocation7], %s1732_s25, %s1732_s25, %s1733_s26  }
  0x13   :  { %s1734_s29 = smov [#allocation3]   ;;  %s1735_s5 = smov [#allocation8]  }
  0x14   :  { %s18_s30 = sshll.u32 %s1734_s29, 4  ;;  %s39_s6 = sshll.u32 %s1735_s5, 4  ;;  %s19_s30 = int_to_ptr.vmem [resolvable:$true] %s18_s30  ;;  %s40_s6 = int_to_ptr.vmem [resolvable:$true] %s39_s6 }
  0x15   :  { %s1659_s9 = scalar_lea.hbm %s2083_s0, 128 }
  0x16   :  { %p1660_p8 = scmp.ne.s32.totalorder %s2083_s0, %s1659_s9  ;;  %p1663_p9 = scmp.lt.u32.totalorder %s1659_s9, %s2083_s0 }
  0x18   :  { %p1665_p10 = pnand %p1663_p9, %p1660_p8 }
  0x1a   :  { %1668 = shalt.err (!%p1665_p10)
}
  0x1b   :  { %s1669_s1 = scalar_lea.vmem %s19_s30, 128  ;;  %p1674_p12 = scmp.lt.s32.totalorder %s19_s30, %s19_s30 }
  0x1c   :  { %p1670_p11 = scmp.ne.s32.totalorder %s19_s30, %s1669_s1  ;;  %p1675_p13 = scmp.lt.s32.totalorder %s1669_s1, %s1669_s1 }
  0x1e   :  { %p1676_p0 = por %p1675_p13, %p1674_p12 }
  0x20   :  { %p1677_p1 = pnand %p1676_p0, %p1670_p11 }
  0x22   :  { %1680 = shalt.err (!%p1677_p1)
}
  0x23   :  { %21 = dma.hbm_to_vmem [thread:$0]  %s2083_s0, 128, %s19_s30, [#allocation4]  }
  0x24   :  { %s1681_s18 = scalar_lea.hbm %s2085_s2, 512 }
  0x25   :  { %p1682_p2 = scmp.ne.s32.totalorder %s2085_s2, %s1681_s18  ;;  %p1685_p3 = scmp.lt.u32.totalorder %s1681_s18, %s2085_s2 }
  0x27   :  { %p1687_p4 = pnand %p1685_p3, %p1682_p2 }
  0x29   :  { %1690 = shalt.err (!%p1687_p4)
}
  0x2a   :  { %s1691_s23 = scalar_lea.vmem %s40_s6, 512  ;;  %p1696_p6 = scmp.lt.s32.totalorder %s40_s6, %s40_s6 }
  0x2b   :  { %p1692_p5 = scmp.ne.s32.totalorder %s40_s6, %s1691_s23  ;;  %p1697_p7 = scmp.lt.s32.totalorder %s1691_s23, %s1691_s23 }
  0x2d   :  { %p1698_p8 = por %p1697_p7, %p1696_p6 }
  0x2f   :  { %p1699_p9 = pnand %p1698_p8, %p1692_p5 }
  0x31   :  { %1702 = shalt.err (!%p1699_p9)
}
  0x32   :  { %45 = dma.hbm_to_vmem [thread:$0]  %s2085_s2, 512, %s40_s6, [#allocation7], %s1732_s25, %s1732_s25, %s1733_s26  }
  0x33   :  { %1725 = dma.done.wait [#allocation4], 128  }
  0x34   :  { %1726 = vsyncadd [#allocation4], 4294967168 }
  0x35   :  { %1727 = dma.done.wait [#allocation7], 1024  }
  0x36   :  { %1728 = vsyncadd [#allocation7], 4294966272  ;;  %v1736_v0 = vmov 0.0|0.0   ;;  %vm1737_vm0 = vmmov 0   ;;  %v1738_v1 = vmov 0.0   ;;  %v58_v2 = vld [vmem:[#allocation6] sm:$0xff] }
  0x37   :  { %1474 = vmatprep.subr.bf16.mxu1 %v1736_v0  ;;  %1374 = vmatprep.mubr.msk.f32.mxu1 %vm1737_vm0, %v1738_v1  ;;  %v59_v3 = vld [vmem:[#allocation6 + $0x8] sm:$0xff]  ;;  %v60_v4 = vld [vmem:[#allocation6 + $0x10] sm:$0xff]  ;;  %v61_v6 = vld [vmem:[#allocation6 + $0x18] sm:$0xff]  ;;  %s1739_s2 = smov 64   ;;  %s1740_s27 = smov 32   ;;  %vm62_vm1 = vcmask 261120  }
  0x38   :  { %1486 = vmatprep.subr.bf16.mxu0 %v1736_v0  ;;  %1396 = vmatprep.mubr.msk.f32.mxu0 %vm1737_vm0, %v1738_v1  ;;  %v1815_v5 = vpack.c.bf16 %v59_v3, %v58_v2  ;;  %v1818_v7 = vpack.c.bf16 %v61_v6, %v60_v4  ;;  %v1834_v8 = vld [vmem:[#allocation3] sm:$0xff] }
  0x3a   :  { %1476 = vmatpush3.bf16.msra.mxu1 %v1815_v5  ;;  %1488 = vmatpush3.bf16.msra.mxu0 %v1815_v5 }
  0x3b   :  { %1477 = vmatprep.subr.bf16.mxu1 %v1736_v0  ;;  %1489 = vmatprep.subr.bf16.mxu0 %v1736_v0 }
  0x3e   :  { %1479 = vmatpush3.bf16.msra.mxu1 %v1818_v7  ;;  %1491 = vmatpush3.bf16.msra.mxu0 %v1818_v7 }
  0x3f   :  { %1480 = vmatprep.subr.bf16.mxu1 %v1736_v0  ;;  %1498 = vmatprep.subr.bf16.mxu0 %v1736_v0 }
  0x41   :  { %1375 = vmatmul.mubr.f32.vlgmr.msra.gmra.mrb[0].mxu1 %v1738_v1 }
  0x42   :  { %1482 = vmatpush3.bf16.msra.mxu1 %v1815_v5  ;;  %1385 = vmatprep.mubr.msk.f32.mxu1 %vm1737_vm0, %v1738_v1 }
  0x43   :  { %1483 = vmatprep.subr.bf16.mxu1 %v1736_v0 }
  0x46   :  { %1485 = vmatpush3.bf16.msra.mxu1 %v1818_v7 }
  0x47   :  { %1492 = vmatprep.subr.bf16.mxu1 %v1736_v0 }
 0x114   :  { %v132_v9 = vpop.f32.mrb[0].mxu1 }
 0x115   :  { %v136_v10 = vadd.f32 %v132_v9, %v1834_v8  ;;  %v1376_v11 = vpop.f32.mrb[1].mxu1 }
 0x117   :  { %v1266_v12 = vmul.f32 -1.442695, %v136_v10 }
 0x119   :  { %1541 = vpow2.f32 %v1266_v12 }
 0x123   :  { %v1542_v13 = vpop.eup %1541 }
 0x124   :  { %v140_v14 = vadd.f32 1.0, %v1542_v13 }
 0x126   :  { %1543 = vrcp.f32 %v140_v14 }
 0x130   :  { %v1544_v15 = vpop.eup %1543 }
 0x131   :  { %v143_v16 = vmul.f32 2.0, %v1544_v15  ;;  %v145_v20 = vmul.f32 0.0, %v1544_v15 }
 0x133   :  { %v1267_v17 = vadd.f32 -1.0, %v143_v16 }
 0x135   :  { %147 = vrot.lane.b32.xlu0 %v1267_v17, %s1739_s2 }
 0x1a7   :  { %v148_v18 = vpop.permute.xlu0 %147 }
 0x1a8   :  { %v150_v19 = vmul.f32 %v1544_v15, %v148_v18 }
 0x1aa   :  { %152 = vrot.lane.b32.xlu0 %v150_v19, %s1740_s27 }
 0x21c   :  { %v153_v21 = vpop.permute.xlu0 %152 }
 0x21d   :  { %v155_v22 = vadd.f32 %v153_v21, %v145_v20 }
 0x21f   :  { %v1268_v23 = vmul.f32 -2.0, %v155_v22 }
 0x221   :  { %v158_v24 = vmul.f32 1.442695, %v1268_v23 }
 0x223   :  { %1545 = vpow2.f32 %v158_v24 }
 0x22d   :  { %v1546_v25 = vpop.eup %1545 }
 0x22e   :  { %v160_v26 = vadd.f32 1.0, %v1546_v25 }
 0x230   :  { %1547 = vrcp.f32 %v160_v26 }
 0x23a   :  { %v1548_v27 = vpop.eup %1547 }
 0x23b   :  { %v163_v28 = vmul.f32 2.0, %v1548_v27 }
 0x23d   :  { %v1269_v29 = vadd.f32 -1.0, %v163_v28 }
 0x23f   :  { %166 = vrot.lane.b32.xlu1 %v1269_v29, %s1739_s2 }
 0x2b1   :  { %v167_v30 = vpop.permute.xlu1 %166 }
 0x2b2   :  { %v169_v31 = vmul.f32 %v1544_v15, %v167_v30 }
 0x2b4   :  { %171 = vrot.lane.b32.xlu1 %v169_v31, %s1740_s27 }
 0x326   :  { %v172_v32 = vpop.permute.xlu1 %171 }
 0x327   :  { %174 = vst.msk [vmem:[#allocation2] sm:$0xff] %vm62_vm1, %v172_v32  ;;  %1386 = vmatmul.mubr.msk.f32.vlgmr.msra.gmra.mrb[2].mxu1 %vm62_vm1, %v172_v32 }
 0x328   :  { %1494 = vmatpush3.bf16.msra.mxu1 %v1815_v5  ;;  %1407 = vmatprep.mubr.msk.f32.mxu1 %vm1737_vm0, %v1738_v1 }
 0x329   :  { %1495 = vmatprep.subr.bf16.mxu1 %v1736_v0 }
 0x32c   :  { %1497 = vmatpush3.bf16.msra.mxu1 %v1818_v7 }
 0x32d   :  { %1504 = vmatprep.subr.bf16.mxu1 %v1736_v0 }
 0x3fa   :  { %v243_v33 = vpop.f32.mrb[2].mxu1 }
 0x3fb   :  { %v247_v34 = vadd.f32 %v243_v33, %v1834_v8  ;;  %v1387_v35 = vpop.f32.mrb[3].mxu1 }
 0x3fd   :  { %v1271_v36 = vmul.f32 -1.442695, %v247_v34 }
 0x3ff   :  { %1549 = vpow2.f32 %v1271_v36 }
 0x409   :  { %v1550_v37 = vpop.eup %1549 }
 0x40a   :  { %v251_v38 = vadd.f32 1.0, %v1550_v37 }
 0x40c   :  { %1551 = vrcp.f32 %v251_v38 }
 0x416   :  { %v1552_v39 = vpop.eup %1551 }
 0x417   :  { %v254_v40 = vmul.f32 2.0, %v1552_v39  ;;  %v256_v44 = vmul.f32 %v1552_v39, %v155_v22 }
 0x419   :  { %v1272_v41 = vadd.f32 -1.0, %v254_v40 }
 0x41b   :  { %258 = vrot.lane.b32.xlu0 %v1272_v41, %s1739_s2 }
 0x48d   :  { %v259_v42 = vpop.permute.xlu0 %258 }
 0x48e   :  { %v261_v43 = vmul.f32 %v1552_v39, %v259_v42 }
 0x490   :  { %263 = vrot.lane.b32.xlu1 %v261_v43, %s1740_s27 }
 0x502   :  { %v264_v45 = vpop.permute.xlu1 %263 }
 0x503   :  { %v266_v46 = vadd.f32 %v264_v45, %v256_v44 }
 0x505   :  { %v1273_v47 = vmul.f32 -2.0, %v266_v46 }
 0x507   :  { %v269_v48 = vmul.f32 1.442695, %v1273_v47 }
 0x509   :  { %1553 = vpow2.f32 %v269_v48 }
 0x513   :  { %v1554_v49 = vpop.eup %1553 }
 0x514   :  { %v271_v50 = vadd.f32 1.0, %v1554_v49 }
 0x516   :  { %1555 = vrcp.f32 %v271_v50 }
 0x520   :  { %v1556_v51 = vpop.eup %1555 }
 0x521   :  { %v274_v52 = vmul.f32 2.0, %v1556_v51 }
 0x523   :  { %v1274_v53 = vadd.f32 -1.0, %v274_v52 }
 0x525   :  { %277 = vrot.lane.b32.xlu0 %v1274_v53, %s1739_s2 }
 0x597   :  { %v278_v54 = vpop.permute.xlu0 %277 }
 0x598   :  { %v280_v55 = vmul.f32 %v1552_v39, %v278_v54 }
 0x59a   :  { %282 = vrot.lane.b32.xlu1 %v280_v55, %s1740_s27 }
 0x60c   :  { %v283_v56 = vpop.permute.xlu1 %282 }
 0x60d   :  { %286 = vst.msk [vmem:[#allocation2 + $0x8] sm:$0xff] %vm62_vm1, %v283_v56  ;;  %1397 = vmatmul.mubr.msk.f32.vlgmr.msra.gmra.mrb[0].mxu0 %vm62_vm1, %v283_v56 }
 0x60e   :  { %1500 = vmatpush3.bf16.msra.mxu0 %v1815_v5  ;;  %1418 = vmatprep.mubr.msk.f32.mxu0 %vm1737_vm0, %v1738_v1 }
 0x60f   :  { %1501 = vmatprep.subr.bf16.mxu0 %v1736_v0 }
 0x612   :  { %1503 = vmatpush3.bf16.msra.mxu0 %v1818_v7 }
 0x613   :  { %1510 = vmatprep.subr.bf16.mxu0 %v1736_v0 }
 0x6e0   :  { %v355_v57 = vpop.f32.mrb[0].mxu0 }
 0x6e1   :  { %v359_v58 = vadd.f32 %v355_v57, %v1834_v8  ;;  %v1398_v59 = vpop.f32.mrb[1].mxu0 }
 0x6e3   :  { %v1276_v60 = vmul.f32 -1.442695, %v359_v58 }
 0x6e5   :  { %1557 = vpow2.f32 %v1276_v60 }
 0x6ef   :  { %v1558_v61 = vpop.eup %1557 }
 0x6f0   :  { %v363_v62 = vadd.f32 1.0, %v1558_v61 }
 0x6f2   :  { %1559 = vrcp.f32 %v363_v62 }
 0x6fc   :  { %v1560_v63 = vpop.eup %1559 }
 0x6fd   :  { %v366_v2 = vmul.f32 2.0, %v1560_v63  ;;  %v368_v9 = vmul.f32 %v1560_v63, %v266_v46 }
 0x6ff   :  { %v1277_v3 = vadd.f32 -1.0, %v366_v2 }
 0x701   :  { %370 = vrot.lane.b32.xlu0 %v1277_v3, %s1739_s2 }
 0x773   :  { %v371_v4 = vpop.permute.xlu0 %370 }
 0x774   :  { %v373_v6 = vmul.f32 %v1560_v63, %v371_v4 }
 0x776   :  { %375 = vrot.lane.b32.xlu1 %v373_v6, %s1740_s27 }
 0x7e8   :  { %v376_v10 = vpop.permute.xlu1 %375 }
 0x7e9   :  { %v378_v11 = vadd.f32 %v376_v10, %v368_v9 }
 0x7eb   :  { %v1278_v12 = vmul.f32 -2.0, %v378_v11 }
 0x7ed   :  { %v381_v13 = vmul.f32 1.442695, %v1278_v12 }
 0x7ef   :  { %1561 = vpow2.f32 %v381_v13 }
 0x7f9   :  { %v1562_v14 = vpop.eup %1561 }
 0x7fa   :  { %v383_v15 = vadd.f32 1.0, %v1562_v14 }
 0x7fc   :  { %1563 = vrcp.f32 %v383_v15 }
 0x806   :  { %v1564_v16 = vpop.eup %1563 }
 0x807   :  { %v386_v17 = vmul.f32 2.0, %v1564_v16 }
 0x809   :  { %v1279_v18 = vadd.f32 -1.0, %v386_v17 }
 0x80b   :  { %389 = vrot.lane.b32.xlu0 %v1279_v18, %s1739_s2 }
 0x87d   :  { %v390_v19 = vpop.permute.xlu0 %389 }
 0x87e   :  { %v392_v20 = vmul.f32 %v1560_v63, %v390_v19 }
 0x880   :  { %394 = vrot.lane.b32.xlu1 %v392_v20, %s1740_s27 }
 0x8f2   :  { %v395_v21 = vpop.permute.xlu1 %394 }
 0x8f3   :  { %398 = vst.msk [vmem:[#allocation2 + $0x10] sm:$0xff] %vm62_vm1, %v395_v21  ;;  %1408 = vmatmul.mubr.msk.f32.vlgmr.msra.gmra.mrb[4].mxu1 %vm62_vm1, %v395_v21 }
 0x8f4   :  { %1506 = vmatpush3.bf16.msra.mxu1 %v1815_v5  ;;  %1429 = vmatprep.mubr.msk.f32.mxu1 %vm1737_vm0, %v1738_v1 }
 0x8f5   :  { %1507 = vmatprep.subr.bf16.mxu1 %v1736_v0 }
 0x8f8   :  { %1509 = vmatpush3.bf16.msra.mxu1 %v1818_v7 }
 0x8f9   :  { %1516 = vmatprep.subr.bf16.mxu1 %v1736_v0 }
 0x9c6   :  { %v467_v22 = vpop.f32.mrb[4].mxu1 }
 0x9c7   :  { %v471_v23 = vadd.f32 %v467_v22, %v1834_v8  ;;  %v1409_v24 = vpop.f32.mrb[5].mxu1 }
 0x9c9   :  { %v1281_v25 = vmul.f32 -1.442695, %v471_v23 }
 0x9cb   :  { %1565 = vpow2.f32 %v1281_v25  ;;  %v967_v25 = vld [vmem:[#allocation8] sm:$0xff] }
 0x9d5   :  { %v1566_v26 = vpop.eup %1565 }
 0x9d6   :  { %v475_v27 = vadd.f32 1.0, %v1566_v26  ;;  %v968_v26 = vld [vmem:[#allocation8 + $0x8] sm:$0xff] }
 0x9d8   :  { %1567 = vrcp.f32 %v475_v27  ;;  %v1522_v27 = vpack.c.bf16 %v968_v26, %v967_v25 }
 0x9e2   :  { %v1568_v28 = vpop.eup %1567 }
 0x9e3   :  { %v478_v29 = vmul.f32 2.0, %v1568_v28  ;;  %v480_v33 = vmul.f32 %v1568_v28, %v378_v11 }
 0x9e5   :  { %v1282_v30 = vadd.f32 -1.0, %v478_v29 }
 0x9e7   :  { %482 = vrot.lane.b32.xlu0 %v1282_v30, %s1739_s2 }
 0xa59   :  { %v483_v31 = vpop.permute.xlu0 %482 }
 0xa5a   :  { %v485_v32 = vmul.f32 %v1568_v28, %v483_v31 }
 0xa5c   :  { %487 = vrot.lane.b32.xlu1 %v485_v32, %s1740_s27 }
 0xace   :  { %v488_v34 = vpop.permute.xlu1 %487 }
 0xacf   :  { %v490_v35 = vadd.f32 %v488_v34, %v480_v33  ;;  %v969_v33 = vld [vmem:[#allocation8 + $0x10] sm:$0xff]  ;;  %v970_v34 = vld [vmem:[#allocation8 + $0x18] sm:$0xff] }
 0xad1   :  { %v1283_v36 = vmul.f32 -2.0, %v490_v35 }
 0xad3   :  { %v493_v37 = vmul.f32 1.442695, %v1283_v36 }
 0xad5   :  { %1569 = vpow2.f32 %v493_v37  ;;  %v959_v37 = vld [vmem:[#allocation2] sm:$0xff] }
 0xadf   :  { %v1570_v38 = vpop.eup %1569 }
 0xae0   :  { %v495_v39 = vadd.f32 1.0, %v1570_v38  ;;  %v960_v38 = vld [vmem:[#allocation2 + $0x8] sm:$0xff] }
 0xae2   :  { %1571 = vrcp.f32 %v495_v39  ;;  %v961_v39 = vld [vmem:[#allocation2 + $0x10] sm:$0xff] }
 0xaec   :  { %v1572_v40 = vpop.eup %1571 }
 0xaed   :  { %v498_v41 = vmul.f32 2.0, %v1572_v40 }
 0xaef   :  { %v1284_v42 = vadd.f32 -1.0, %v498_v41 }
 0xaf1   :  { %501 = vrot.lane.b32.xlu0 %v1284_v42, %s1739_s2 }
 0xb63   :  { %v502_v43 = vpop.permute.xlu0 %501 }
 0xb64   :  { %v504_v44 = vmul.f32 %v1568_v28, %v502_v43 }
 0xb66   :  { %506 = vrot.lane.b32.xlu1 %v504_v44, %s1740_s27 }
 0xbd8   :  { %v507_v45 = vpop.permute.xlu1 %506 }
 0xbd9   :  { %510 = vst.msk [vmem:[#allocation2 + $0x18] sm:$0xff] %vm62_vm1, %v507_v45  ;;  %1419 = vmatmul.mubr.msk.f32.vlgmr.msra.gmra.mrb[2].mxu0 %vm62_vm1, %v507_v45 }
 0xbda   :  { %1512 = vmatpush3.bf16.msra.mxu0 %v1815_v5  ;;  %1440 = vmatprep.mubr.msk.f32.mxu0 %vm1737_vm0, %v1738_v1 }
 0xbdb   :  { %1513 = vmatprep.subr.bf16.mxu0 %v1736_v0 }
 0xbde   :  { %1515 = vmatpush3.bf16.msra.mxu0 %v1818_v7 }
 0xbdf   :  { %1523 = vmatprep.subr.bf16.mxu0 %v1522_v27 }
 0xbe0   :  { %v962_v40 = vld [vmem:[#allocation2 + $0x18] sm:$0xff] }
 0xcac   :  { %v579_v46 = vpop.f32.mrb[2].mxu0 }
 0xcad   :  { %v583_v47 = vadd.f32 %v579_v46, %v1834_v8  ;;  %v1420_v48 = vpop.f32.mrb[3].mxu0 }
 0xcaf   :  { %v1286_v49 = vmul.f32 -1.442695, %v583_v47 }
 0xcb1   :  { %1573 = vpow2.f32 %v1286_v49 }
 0xcbb   :  { %v1574_v50 = vpop.eup %1573 }
 0xcbc   :  { %v587_v51 = vadd.f32 1.0, %v1574_v50 }
 0xcbe   :  { %1575 = vrcp.f32 %v587_v51 }
 0xcc8   :  { %v1576_v52 = vpop.eup %1575 }
 0xcc9   :  { %v590_v53 = vmul.f32 2.0, %v1576_v52  ;;  %v592_v57 = vmul.f32 %v1576_v52, %v490_v35  ;;  %v1526_v35 = vpack.c.bf16 %v970_v34, %v969_v33  ;;  %v1305_v33 = vld [vmem:[%s2086_s3] ss:$0 sm:$0xff]  ;;  %s1741_s3 = smov [#allocation9]  }
 0xcca   :  { %s1253_s30 = sshll.u32 %s1741_s3, 4  ;;  %s1254_s30 = int_to_ptr.vmem [resolvable:$true] %s1253_s30 }
 0xccb   :  { %v1287_v54 = vadd.f32 -1.0, %v590_v53  ;;  %s1703_s5 = scalar_lea.vmem %s1254_s30, 1024  ;;  %p1708_p11 = scmp.lt.s32.totalorder %s1254_s30, %s1254_s30 }
 0xccc   :  { %p1704_p10 = scmp.ne.s32.totalorder %s1254_s30, %s1703_s5  ;;  %p1709_p12 = scmp.lt.s32.totalorder %s1703_s5, %s1703_s5 }
 0xccd   :  { %594 = vrot.lane.b32.xlu0 %v1287_v54, %s1739_s2 }
 0xcce   :  { %p1710_p13 = por %p1709_p12, %p1708_p11 }
 0xcd0   :  { %p1711_p0 = pnand %p1710_p13, %p1704_p10 }
 0xd3f   :  { %v595_v55 = vpop.permute.xlu0 %594 }
 0xd40   :  { %v597_v56 = vmul.f32 %v1576_v52, %v595_v55 }
 0xd42   :  { %599 = vrot.lane.b32.xlu1 %v597_v56, %s1740_s27 }
 0xdb4   :  { %v600_v58 = vpop.permute.xlu1 %599 }
 0xdb5   :  { %v602_v59 = vadd.f32 %v600_v58, %v592_v57 }
 0xdb7   :  { %v1288_v60 = vmul.f32 -2.0, %v602_v59 }
 0xdb9   :  { %v605_v61 = vmul.f32 1.442695, %v1288_v60 }
 0xdbb   :  { %1577 = vpow2.f32 %v605_v61 }
 0xdc5   :  { %v1578_v62 = vpop.eup %1577 }
 0xdc6   :  { %v607_v63 = vadd.f32 1.0, %v1578_v62 }
 0xdc8   :  { %1579 = vrcp.f32 %v607_v63 }
 0xdd2   :  { %v1580_v2 = vpop.eup %1579 }
 0xdd3   :  { %v610_v3 = vmul.f32 2.0, %v1580_v2 }
 0xdd5   :  { %v1289_v4 = vadd.f32 -1.0, %v610_v3 }
 0xdd7   :  { %613 = vrot.lane.b32.xlu0 %v1289_v4, %s1739_s2 }
 0xe49   :  { %v614_v6 = vpop.permute.xlu0 %613 }
 0xe4a   :  { %v616_v9 = vmul.f32 %v1576_v52, %v614_v6 }
 0xe4c   :  { %618 = vrot.lane.b32.xlu1 %v616_v9, %s1740_s27 }
 0xebe   :  { %v619_v10 = vpop.permute.xlu1 %618 }
 0xebf   :  { %622 = vst.msk [vmem:[#allocation2 + $0x20] sm:$0xff] %vm62_vm1, %v619_v10  ;;  %1430 = vmatmul.mubr.msk.f32.vlgmr.msra.gmra.mrb[6].mxu1 %vm62_vm1, %v619_v10 }
 0xec0   :  { %1518 = vmatpush3.bf16.msra.mxu1 %v1815_v5  ;;  %1451 = vmatprep.mubr.msk.f32.mxu1 %vm1737_vm0, %v1738_v1 }
 0xec1   :  { %1519 = vmatprep.subr.bf16.mxu1 %v1736_v0 }
 0xec4   :  { %1521 = vmatpush3.bf16.msra.mxu1 %v1818_v7 }
 0xec6   :  { %v963_v41 = vld [vmem:[#allocation2 + $0x20] sm:$0xff] }
 0xf92   :  { %v691_v11 = vpop.f32.mrb[6].mxu1 }
 0xf93   :  { %v695_v12 = vadd.f32 %v691_v11, %v1834_v8  ;;  %v1431_v13 = vpop.f32.mrb[7].mxu1 }
 0xf95   :  { %v1291_v14 = vmul.f32 -1.442695, %v695_v12 }
 0xf97   :  { %1581 = vpow2.f32 %v1291_v14 }
 0xfa1   :  { %v1582_v15 = vpop.eup %1581 }
 0xfa2   :  { %v699_v16 = vadd.f32 1.0, %v1582_v15 }
 0xfa4   :  { %1583 = vrcp.f32 %v699_v16 }
 0xfae   :  { %v1584_v17 = vpop.eup %1583 }
 0xfaf   :  { %v702_v18 = vmul.f32 2.0, %v1584_v17  ;;  %v704_v0 = vmul.f32 %v1584_v17, %v602_v59 }
 0xfb1   :  { %v1292_v19 = vadd.f32 -1.0, %v702_v18 }
 0xfb3   :  { %706 = vrot.lane.b32.xlu0 %v1292_v19, %s1739_s2 }
0x1025   :  { %v707_v5 = vpop.permute.xlu0 %706 }
0x1026   :  { %v709_v1 = vmul.f32 %v1584_v17, %v707_v5 }
0x1028   :  { %711 = vrot.lane.b32.xlu1 %v709_v1, %s1740_s27 }
0x109a   :  { %v712_v7 = vpop.permute.xlu1 %711 }
0x109b   :  { %v714_v20 = vadd.f32 %v712_v7, %v704_v0 }
0x109d   :  { %v1293_v21 = vmul.f32 -2.0, %v714_v20 }
0x109f   :  { %v717_v22 = vmul.f32 1.442695, %v1293_v21 }
0x10a1   :  { %1585 = vpow2.f32 %v717_v22 }
0x10ab   :  { %v1586_v23 = vpop.eup %1585 }
0x10ac   :  { %v719_v24 = vadd.f32 1.0, %v1586_v23 }
0x10ae   :  { %1587 = vrcp.f32 %v719_v24 }
0x10b8   :  { %v1588_v28 = vpop.eup %1587 }
0x10b9   :  { %v722_v29 = vmul.f32 2.0, %v1588_v28 }
0x10bb   :  { %v1294_v30 = vadd.f32 -1.0, %v722_v29 }
0x10bd   :  { %725 = vrot.lane.b32.xlu0 %v1294_v30, %s1739_s2 }
0x112f   :  { %v726_v31 = vpop.permute.xlu0 %725 }
0x1130   :  { %v728_v32 = vmul.f32 %v1584_v17, %v726_v31  ;;  %v1107_v31 = vlaneseq }
0x1132   :  { %730 = vrot.lane.b32.xlu1 %v728_v32, %s1740_s27  ;;  %v1108_v32 = vand.u32 127, %v1107_v31 }
0x1134   :  { %vm1109_vm2 = vcmp.ge.s32.totalorder %v1108_v32, 16  ;;  %vm1110_vm3 = vcmp.lt.s32.totalorder %v1108_v32, 24 }
0x1135   :  { %vm1942_vm4 = vmand %vm1109_vm2, %vm1110_vm3 }
0x11a4   :  { %v731_v36 = vpop.permute.xlu1 %730 }
0x11a5   :  { %734 = vst.msk [vmem:[#allocation2 + $0x28] sm:$0xff] %vm62_vm1, %v731_v36  ;;  %1441 = vmatmul.mubr.msk.f32.vlgmr.msra.gmra.mrb[4].mxu0 %vm62_vm1, %v731_v36 }
0x11a6   :  { %1525 = vmatpush3.bf16.msra.mxu0 %v1522_v27  ;;  %1462 = vmatprep.mubr.msk.f32.mxu0 %vm62_vm1, %v959_v37 }
0x11a7   :  { %1527 = vmatprep.subr.bf16.mxu0 %v1526_v35 }
0x11aa   :  { %1529 = vmatpush3.bf16.msra.mxu0 %v1526_v35 }
0x11ac   :  { %v964_v42 = vld [vmem:[#allocation2 + $0x28] sm:$0xff] }
0x11ad   :  { %1463 = vmatmul.mubr.msk.f32.vlgmr.msra.gmra.mrb[6].mxu0 %vm62_vm1, %v960_v38 }
0x11ae   :  { %1465 = vmatprep.mubr.msk.f32.mxu0 %vm62_vm1, %v961_v39 }
0x11b1   :  { %1466 = vmatmul.mubr.msk.f32.gmra.mrb[8].mxu0 %vm62_vm1, %v962_v40 }
0x11b2   :  { %1468 = vmatprep.mubr.msk.f32.mxu0 %vm62_vm1, %v963_v41 }
0x11b5   :  { %1469 = vmatmul.mubr.msk.f32.gmra.mrb[10].mxu0 %vm62_vm1, %v964_v42 }
0x1278   :  { %v803_v43 = vpop.f32.mrb[4].mxu0 }
0x1279   :  { %v807_v44 = vadd.f32 %v803_v43, %v1834_v8  ;;  %v1442_v45 = vpop.f32.mrb[5].mxu0 }
0x127b   :  { %v1296_v46 = vmul.f32 -1.442695, %v807_v44 }
0x127d   :  { %1589 = vpow2.f32 %v1296_v46 }
0x1280   :  { %v1913_v47 = vpop.f32.mrb[6].mxu0 }
0x1281   :  { %v1915_v48 = vpop.f32.mrb[7].mxu0  ;;  %v1969_v45 = vadd.f32 %v1913_v47, %v1305_v33 }
0x1282   :  { %v1940_v34 = vadd.f32 %v1305_v33, %v1915_v48 }
0x1283   :  { %v1113_v48 = vsel %vm1942_vm4, %v1969_v45, -1e+30 }
0x1284   :  { %v1917_v49 = vpop.f32.mrb[8].mxu0  ;;  %v1112_v37 = vsel %vm1942_vm4, %v1940_v34, -1e+30 }
0x1285   :  { %v1919_v50 = vpop.f32.mrb[9].mxu0  ;;  %v1953_v38 = vadd.f32 %v1917_v49, %v1305_v33 }
0x1286   :  { %v1947_v36 = vadd.f32 %v1305_v33, %v1919_v50 }
0x1287   :  { %v1590_v51 = vpop.eup %1589  ;;  %v1115_v41 = vsel %vm1942_vm4, %v1953_v38, -1e+30 }
0x1288   :  { %v811_v52 = vadd.f32 1.0, %v1590_v51  ;;  %v1921_v53 = vpop.f32.mrb[10].mxu0  ;;  %v1114_v39 = vsel %vm1942_vm4, %v1947_v36, -1e+30 }
0x1289   :  { %v1923_v54 = vpop.f32.mrb[11].mxu0  ;;  %v1959_v40 = vadd.f32 %v1921_v53, %v1305_v33 }
0x128a   :  { %1591 = vrcp.f32 %v811_v52  ;;  %v1972_v46 = vadd.f32 %v1305_v33, %v1923_v54 }
0x128b   :  { %v1117_v42 = vsel %vm1942_vm4, %v1959_v40, -1e+30 }
0x128c   :  { %v1116_v49 = vsel %vm1942_vm4, %v1972_v46, -1e+30 }
0x1294   :  { %v1592_v55 = vpop.eup %1591 }
0x1295   :  { %v814_v56 = vmul.f32 2.0, %v1592_v55  ;;  %v816_v60 = vmul.f32 %v1592_v55, %v714_v20 }
0x1297   :  { %v1297_v57 = vadd.f32 -1.0, %v814_v56 }
0x1299   :  { %818 = vrot.lane.b32.xlu0 %v1297_v57, %s1739_s2 }
0x130b   :  { %v819_v58 = vpop.permute.xlu0 %818 }
0x130c   :  { %v821_v59 = vmul.f32 %v1592_v55, %v819_v58 }
0x130e   :  { %823 = vrot.lane.b32.xlu1 %v821_v59, %s1740_s27 }
0x1380   :  { %v824_v61 = vpop.permute.xlu1 %823 }
0x1381   :  { %v826_v62 = vadd.f32 %v824_v61, %v816_v60 }
0x1383   :  { %v1298_v63 = vmul.f32 -2.0, %v826_v62 }
0x1385   :  { %v829_v2 = vmul.f32 1.442695, %v1298_v63 }
0x1387   :  { %1593 = vpow2.f32 %v829_v2 }
0x1391   :  { %v1594_v3 = vpop.eup %1593 }
0x1392   :  { %v831_v4 = vadd.f32 1.0, %v1594_v3 }
0x1394   :  { %1595 = vrcp.f32 %v831_v4 }
0x139e   :  { %v1596_v6 = vpop.eup %1595 }
0x139f   :  { %v834_v9 = vmul.f32 2.0, %v1596_v6 }
0x13a1   :  { %v1299_v10 = vadd.f32 -1.0, %v834_v9 }
0x13a3   :  { %837 = vrot.lane.b32.xlu0 %v1299_v10, %s1739_s2 }
0x1415   :  { %v838_v11 = vpop.permute.xlu0 %837 }
0x1416   :  { %v840_v12 = vmul.f32 %v1592_v55, %v838_v11 }
0x1418   :  { %842 = vrot.lane.b32.xlu1 %v840_v12, %s1740_s27 }
0x148a   :  { %v843_v13 = vpop.permute.xlu1 %842 }
0x148b   :  { %846 = vst.msk [vmem:[#allocation2 + $0x30] sm:$0xff] %vm62_vm1, %v843_v13  ;;  %1452 = vmatmul.mubr.msk.f32.vlgmr.msra.gmra.mrb[8].mxu1 %vm62_vm1, %v843_v13 }
0x1492   :  { %v965_v14 = vld [vmem:[#allocation2 + $0x30] sm:$0xff] }
0x1493   :  { %1471 = vmatprep.mubr.msk.f32.mxu0 %vm62_vm1, %v965_v14 }
0x155e   :  { %v915_v15 = vpop.f32.mrb[8].mxu1 }
0x155f   :  { %v919_v16 = vadd.f32 %v915_v15, %v1834_v8  ;;  %v1453_v17 = vpop.f32.mrb[9].mxu1 }
0x1561   :  { %v1301_v18 = vmul.f32 -1.442695, %v919_v16 }
0x1563   :  { %1597 = vpow2.f32 %v1301_v18 }
0x156d   :  { %v1598_v19 = vpop.eup %1597 }
0x156e   :  { %v923_v5 = vadd.f32 1.0, %v1598_v19 }
0x1570   :  { %1599 = vrcp.f32 %v923_v5 }
0x157a   :  { %v1600_v1 = vpop.eup %1599 }
0x157b   :  { %v926_v0 = vmul.f32 2.0, %v1600_v1  ;;  %v928_v22 = vmul.f32 %v1600_v1, %v826_v62 }
0x157d   :  { %v1302_v7 = vadd.f32 -1.0, %v926_v0 }
0x157f   :  { %930 = vrot.lane.b32.xlu0 %v1302_v7, %s1739_s2 }
0x15f1   :  { %v931_v20 = vpop.permute.xlu0 %930 }
0x15f2   :  { %v933_v21 = vmul.f32 %v1600_v1, %v931_v20 }
0x15f4   :  { %935 = vrot.lane.b32.xlu1 %v933_v21, %s1740_s27 }
0x1666   :  { %v936_v23 = vpop.permute.xlu1 %935 }
0x1667   :  { %v938_v24 = vadd.f32 %v936_v23, %v928_v22 }
0x1669   :  { %v1303_v25 = vmul.f32 -2.0, %v938_v24 }
0x166b   :  { %v941_v8 = vmul.f32 1.442695, %v1303_v25 }
0x166d   :  { %1601 = vpow2.f32 %v941_v8 }
0x1677   :  { %v1602_v26 = vpop.eup %1601 }
0x1678   :  { %v943_v27 = vadd.f32 1.0, %v1602_v26 }
0x167a   :  { %1603 = vrcp.f32 %v943_v27 }
0x1684   :  { %v1604_v28 = vpop.eup %1603 }
0x1685   :  { %v946_v29 = vmul.f32 2.0, %v1604_v28 }
0x1687   :  { %v1304_v30 = vadd.f32 -1.0, %v946_v29 }
0x1689   :  { %949 = vrot.lane.b32.xlu0 %v1304_v30, %s1739_s2 }
0x16a8   :  { %1120 = vmax.xlane.f32.xlu0 %v1112_v37 }
0x16ac   :  { %1124 = vmax.xlane.f32.xlu0 %v1114_v39 }
0x16b0   :  { %1126 = vmax.xlane.f32.xlu0 %v1115_v41 }
0x16b4   :  { %1130 = vmax.xlane.f32.xlu0 %v1117_v42 }
0x16fb   :  { %v950_v43 = vpop.permute.xlu0 %949 }
0x16fc   :  { %v952_v44 = vmul.f32 %v1600_v1, %v950_v43 }
0x16fe   :  { %954 = vrot.lane.b32.xlu1 %v952_v44, %s1740_s27 }
0x1722   :  { %1122 = vmax.xlane.f32.xlu1 %v1113_v48 }
0x1726   :  { %1128 = vmax.xlane.f32.xlu1 %v1116_v49 }
0x1735   :  { %v1121_v47 = vpop.xlane.xlu0 %1120 }
0x1736   :  { %v1136_v56 = vsub.f32 %v1940_v34, %v1121_v47 }
0x1738   :  { %v1144_v59 = vsel %vm1942_vm4, %v1136_v56, 0.0 }
0x1739   :  { %v1125_v52 = vpop.xlane.xlu0 %1124  ;;  %v1152_v2 = vmul.f32 1.442695, %v1144_v59 }
0x173a   :  { %v1138_v60 = vsub.f32 %v1947_v36, %v1125_v52 }
0x173c   :  { %v1146_v6 = vsel %vm1942_vm4, %v1138_v60, 0.0 }
0x173d   :  { %v1127_v54 = vpop.xlane.xlu0 %1126  ;;  %v1156_v11 = vmul.f32 1.442695, %v1146_v6 }
0x173e   :  { %v1139_v57 = vsub.f32 %v1953_v38, %v1127_v54 }
0x1740   :  { %v1147_v3 = vsel %vm1942_vm4, %v1139_v57, 0.0 }
0x1741   :  { %v1131_v61 = vpop.xlane.xlu0 %1130  ;;  %v1158_v10 = vmul.f32 1.442695, %v1147_v3 }
0x1742   :  { %v1141_v4 = vsub.f32 %v1959_v40, %v1131_v61 }
0x1744   :  { %v1149_v12 = vsel %vm1942_vm4, %v1141_v4, 0.0 }
0x1745   :  { %v1162_v14 = vmul.f32 1.442695, %v1149_v12 }
0x1770   :  { %v955_v50 = vpop.permute.xlu1 %954 }
0x1771   :  { %958 = vst.msk [vmem:[#allocation2 + $0x38] sm:$0xff] %vm62_vm1, %v955_v50 }
0x1778   :  { %v966_v51 = vld [vmem:[#allocation2 + $0x38] sm:$0xff] }
0x1779   :  { %1472 = vmatmul.mubr.msk.f32.gmra.mrb[12].mxu0 %vm62_vm1, %v966_v51 }
0x17af   :  { %v1123_v53 = vpop.xlane.xlu1 %1122 }
0x17b0   :  { %v1137_v55 = vsub.f32 %v1969_v45, %v1123_v53 }
0x17b2   :  { %v1145_v58 = vsel %vm1942_vm4, %v1137_v55, 0.0 }
0x17b3   :  { %v1129_v62 = vpop.xlane.xlu1 %1128  ;;  %v1154_v63 = vmul.f32 1.442695, %v1145_v58 }
0x17b4   :  { %v1140_v9 = vsub.f32 %v1972_v46, %v1129_v62 }
0x17b5   :  { %1605 = vpow2.f32 %v1154_v63 }
0x17b6   :  { %1607 = vpow2.f32 %v1152_v2  ;;  %v1148_v13 = vsel %vm1942_vm4, %v1140_v9, 0.0 }
0x17b7   :  { %1609 = vpow2.f32 %v1158_v10  ;;  %v1160_v15 = vmul.f32 1.442695, %v1148_v13 }
0x17b8   :  { %1611 = vpow2.f32 %v1156_v11 }
0x17b9   :  { %1613 = vpow2.f32 %v1162_v14 }
0x17ba   :  { %1615 = vpow2.f32 %v1160_v15 }
0x17bf   :  { %v1606_v1 = vpop.eup %1605 }
0x17c0   :  { %v1608_v7 = vpop.eup %1607  ;;  %v1169_v20 = vsel %vm1942_vm4, %v1606_v1, 0.0 }
0x17c1   :  { %v1610_v21 = vpop.eup %1609  ;;  %v1168_v22 = vsel %vm1942_vm4, %v1608_v7, 0.0 }
0x17c2   :  { %v1612_v23 = vpop.eup %1611  ;;  %v1171_v24 = vsel %vm1942_vm4, %v1610_v21, 0.0 }
0x17c3   :  { %v1614_v25 = vpop.eup %1613  ;;  %v2018_v8 = vsel %vm1942_vm4, %v1612_v23, 0.0 }
0x17c4   :  { %v1616_v26 = vpop.eup %1615  ;;  %v2023_v27 = vsel %vm1942_vm4, %v1614_v25, 0.0 }
0x17c5   :  { %v2028_v28 = vsel %vm1942_vm4, %v1616_v26, 0.0 }
0x184c   :  { %v1473_v16 = vpop.f32.mrb[12].mxu0 }
0x184d   :  { %v2000_v17 = vadd.f32 %v1473_v16, %v1305_v33  ;;  %v1098_v18 = vpop.f32.mrb[13].mxu0 }
0x184e   :  { %v2002_v19 = vadd.f32 %v1305_v33, %v1098_v18 }
0x184f   :  { %v1119_v5 = vsel %vm1942_vm4, %v2000_v17, -1e+30 }
0x1850   :  { %1134 = vmax.xlane.f32.xlu0 %v1119_v5  ;;  %v1118_v0 = vsel %vm1942_vm4, %v2002_v19, -1e+30 }
0x1851   :  { %1132 = vmax.xlane.f32.xlu1 %v1118_v0 }
0x1854   :  { %1178 = vadd.xlane.f32.xlu0 %v1169_v20 }
0x1855   :  { %1176 = vadd.xlane.f32.xlu1 %v1168_v22 }
0x1858   :  { %1182 = vadd.xlane.f32.xlu0 %v1171_v24 }
0x1859   :  { %1180 = vadd.xlane.f32.xlu1 %v2018_v8 }
0x185c   :  { %1186 = vadd.xlane.f32.xlu0 %v2023_v27 }
0x185d   :  { %1184 = vadd.xlane.f32.xlu1 %v2028_v28 }
0x18dd   :  { %v1135_v29 = vpop.xlane.xlu0 %1134 }
0x18de   :  { %v1143_v30 = vsub.f32 %v2000_v17, %v1135_v29  ;;  %v1133_v31 = vpop.xlane.xlu1 %1132 }
0x18df   :  { %v1142_v32 = vsub.f32 %v2002_v19, %v1133_v31 }
0x18e0   :  { %v1151_v33 = vsel %vm1942_vm4, %v1143_v30, 0.0 }
0x18e1   :  { %v1166_v37 = vmul.f32 1.442695, %v1151_v33  ;;  %v1150_v39 = vsel %vm1942_vm4, %v1142_v32, 0.0  ;;  %v1179_v41 = vpop.xlane.xlu0 %1178 }
0x18e2   :  { %v1164_v42 = vmul.f32 1.442695, %v1150_v39  ;;  %1617 = vrcp.f32 %v1179_v41  ;;  %v1177_v43 = vpop.xlane.xlu1 %1176 }
0x18e3   :  { %1619 = vpow2.f32 %v1166_v37 }
0x18e4   :  { %1621 = vpow2.f32 %v1164_v42 }
0x18e5   :  { %1623 = vrcp.f32 %v1177_v43  ;;  %v1183_v44 = vpop.xlane.xlu0 %1182 }
0x18e6   :  { %1625 = vrcp.f32 %v1183_v44  ;;  %v1181_v48 = vpop.xlane.xlu1 %1180 }
0x18e7   :  { %1627 = vrcp.f32 %v1181_v48 }
0x18e9   :  { %v1187_v49 = vpop.xlane.xlu0 %1186 }
0x18ea   :  { %1629 = vrcp.f32 %v1187_v49  ;;  %v1185_v50 = vpop.xlane.xlu1 %1184 }
0x18eb   :  { %1631 = vrcp.f32 %v1185_v50 }
0x18ec   :  { %v1618_v51 = vpop.eup %1617 }
0x18ed   :  { %v1620_v47 = vpop.eup %1619  ;;  %v1201_v52 = vmul.f32 %v1618_v51, %v1179_v41 }
0x18ee   :  { %v1622_v53 = vpop.eup %1621  ;;  %v1175_v54 = vsel %vm1942_vm4, %v1620_v47, 0.0 }
0x18ef   :  { %v1624_v55 = vpop.eup %1623  ;;  %v1209_v56 = vsub.f32 2.0, %v1201_v52  ;;  %1190 = vadd.xlane.f32.xlu0 %v1175_v54  ;;  %v1174_v57 = vsel %vm1942_vm4, %v1622_v53, 0.0 }
0x18f0   :  { %v1626_v58 = vpop.eup %1625  ;;  %v1200_v59 = vmul.f32 %v1624_v55, %v1177_v43  ;;  %1188 = vadd.xlane.f32.xlu1 %v1174_v57 }
0x18f1   :  { %v1628_v60 = vpop.eup %1627  ;;  %v1217_v61 = vmul.f32 %v1618_v51, %v1209_v56  ;;  %v1203_v62 = vmul.f32 %v1626_v58, %v1183_v44 }
0x18f2   :  { %v1208_v63 = vsub.f32 2.0, %v1200_v59  ;;  %v1202_v2 = vmul.f32 %v1628_v60, %v1181_v48 }
0x18f3   :  { %v1225_v3 = vmul.f32 %v1217_v61, %v1169_v20  ;;  %v1211_v4 = vsub.f32 2.0, %v1203_v62 }
0x18f4   :  { %v1630_v6 = vpop.eup %1629  ;;  %v1216_v9 = vmul.f32 %v1624_v55, %v1208_v63  ;;  %v1210_v10 = vsub.f32 2.0, %v1202_v2 }
0x18f5   :  { %v1632_v11 = vpop.eup %1631  ;;  %v1233_v12 = vsel %vm1942_vm4, %v1225_v3, %v1969_v45  ;;  %v1219_v13 = vmul.f32 %v1626_v58, %v1211_v4  ;;  %v1205_v14 = vmul.f32 %v1630_v6, %v1187_v49 }
0x18f6   :  { %1241 = vst [vmem:[#allocation9 + $0x8] sm:$0xff] %v1233_v12  ;;  %v1224_v15 = vmul.f32 %v1216_v9, %v1168_v22  ;;  %v1218_v16 = vmul.f32 %v1628_v60, %v1210_v10  ;;  %v1204_v18 = vmul.f32 %v1632_v11, %v1185_v50 }
0x18f7   :  { %v1227_v5 = vmul.f32 %v1219_v13, %v1171_v24  ;;  %v1213_v1 = vsub.f32 2.0, %v1205_v14 }
0x18f8   :  { %v1232_v0 = vsel %vm1942_vm4, %v1224_v15, %v1940_v34  ;;  %v1226_v7 = vmul.f32 %v1218_v16, %v2018_v8  ;;  %v1212_v20 = vsub.f32 2.0, %v1204_v18 }
0x18f9   :  { %1240 = vst [vmem:[#allocation9] sm:$0xff] %v1232_v0  ;;  %v1235_v45 = vsel %vm1942_vm4, %v1227_v5, %v1953_v38  ;;  %v1221_v21 = vmul.f32 %v1630_v6, %v1213_v1 }
0x18fa   :  { %1243 = vst [vmem:[#allocation9 + $0x18] sm:$0xff] %v1235_v45  ;;  %v1234_v22 = vsel %vm1942_vm4, %v1226_v7, %v1947_v36  ;;  %v1220_v23 = vmul.f32 %v1632_v11, %v1212_v20 }
0x18fb   :  { %1242 = vst [vmem:[#allocation9 + $0x10] sm:$0xff] %v1234_v22  ;;  %v1229_v24 = vmul.f32 %v1221_v21, %v2023_v27 }
0x18fc   :  { %v1228_v34 = vmul.f32 %v1220_v23, %v2028_v28 }
0x18fd   :  { %v1237_v25 = vsel %vm1942_vm4, %v1229_v24, %v1959_v40 }
0x18fe   :  { %1245 = vst [vmem:[#allocation9 + $0x28] sm:$0xff] %v1237_v25  ;;  %v1236_v38 = vsel %vm1942_vm4, %v1228_v34, %v1972_v46 }
0x18ff   :  { %1244 = vst [vmem:[#allocation9 + $0x20] sm:$0xff] %v1236_v38 }
0x197c   :  { %v1191_v8 = vpop.xlane.xlu0 %1190 }
0x197d   :  { %1633 = vrcp.f32 %v1191_v8  ;;  %v1189_v26 = vpop.xlane.xlu1 %1188 }
0x197e   :  { %1635 = vrcp.f32 %v1189_v26 }
0x1987   :  { %v1634_v36 = vpop.eup %1633 }
0x1988   :  { %v1636_v29 = vpop.eup %1635  ;;  %v1207_v30 = vmul.f32 %v1634_v36, %v1191_v8 }
0x1989   :  { %v1206_v27 = vmul.f32 %v1636_v29, %v1189_v26 }
0x198a   :  { %v1215_v31 = vsub.f32 2.0, %v1207_v30 }
0x198b   :  { %v1214_v28 = vsub.f32 2.0, %v1206_v27 }
0x198c   :  { %v1223_v32 = vmul.f32 %v1634_v36, %v1215_v31 }
0x198d   :  { %v1222_v33 = vmul.f32 %v1636_v29, %v1214_v28 }
0x198e   :  { %v1231_v40 = vmul.f32 %v1223_v32, %v1175_v54 }
0x198f   :  { %v1230_v37 = vmul.f32 %v1222_v33, %v1174_v57 }
0x1990   :  { %v1239_v46 = vsel %vm1942_vm4, %v1231_v40, %v2000_v17 }
0x1991   :  { %1247 = vst [vmem:[#allocation9 + $0x38] sm:$0xff] %v1239_v46  ;;  %v1238_v39 = vsel %vm1942_vm4, %v1230_v37, %v2002_v19 }
0x1992   :  { %1246 = vst [vmem:[#allocation9 + $0x30] sm:$0xff] %v1238_v39 }
0x1993   :  { %1714 = shalt.err (!%p1711_p0)
}
0x1994   :  { %s1715_s8 = scalar_lea.hbm %s2087_s4, 1024 }
0x1995   :  { %p1716_p1 = scmp.ne.s32.totalorder %s2087_s4, %s1715_s8  ;;  %p1719_p2 = scmp.lt.u32.totalorder %s1715_s8, %s2087_s4 }
0x1997   :  { %p1721_p3 = pnand %p1719_p2, %p1716_p1 }
0x1999   :  { %1724 = shalt.err (!%p1721_p3)
}
0x199a   :  { %1259 = dma.vmem_to_hbm [thread:$0]  %s1254_s30, 1024, %s2087_s4, [#allocation5], %s1732_s25, %s1732_s25, %s1733_s26  }
0x199b   :  { %1729 = dma.done.wait [#allocation5], 1024  }
0x199c   :  { %1730 = vsyncadd [#allocation5], 4294966272 }
0x199d   :  { %1263 = vsyncpa [#allocation4], 1 }
0x199e   :  { %1264 = vsyncpa [#allocation7], 1 }
0x199f   :  { %1265 = vsyncpa [#allocation5], 1 }

</bundles_post_ra>
